<compile_context>
chip_gen: v5e
topology: v5e:2x2
jax: 0.10.0
libtpu: 0.0.40
codegen_flags: <defaults>
</compile_context>

<pallas_src>
import math

import jax
import jax.numpy as jnp
from jax import lax
from jax.experimental import pallas as pl
from jax.experimental.pallas import tpu as pltpu


# PyTorch gate-row order: [i, f, z, o, i_bar, f_bar, delta].
# Permute to [i, f, o, i_bar, f_bar, z, delta] so the 5 sigmoid gates are one
# contiguous slab.
_GATE_PERM = (0, 1, 3, 4, 5, 2, 6)


def _reorder_gate_blocks(arr, hidden_size):
    blocks = [arr[k * hidden_size:(k + 1) * hidden_size] for k in _GATE_PERM]
    return jnp.concatenate(blocks, axis=0)


def _ctlstm_seq_kernel(pre_ref, dt_ref, carry0_ref, wh_ref, out_ref, carry_scr):
    """One grid step == one chunk of C consecutive events.

    pre_ref:    (C, B, 7H) pre-gates x@Wx + b for this chunk (gate-permuted).
    dt_ref:     (C, B, 1)  inter-event times for this chunk.
    carry0_ref: (B, 4H)    packed initial carry [o, cell, cell_bar, decay].
    wh_ref:     (H, 7H)    recurrent weight (gate-permuted), VMEM-resident.
    out_ref:    (C, B, 4H) packed new carry for every event of the chunk.
    carry_scr:  (B, 4H)    VMEM scratch holding the running carry across chunks.
    """
    H = wh_ref.shape[0]
    C = pre_ref.shape[0]

    @pl.when(pl.program_id(0) == 0)
    def _():
        carry_scr[...] = carry0_ref[...]

    wh = wh_ref[...]  # hoisted: loaded once per chunk

    def step(e, carry):
        o_prev = carry[:, 0 * H:1 * H]
        cell = carry[:, 1 * H:2 * H]
        cbar = carry[:, 2 * H:3 * H]
        decay = carry[:, 3 * H:4 * H]

        dt = dt_ref[e]  # (B, 1)

        # Decay the cell state from the previous event time to the current one.
        c_t = cbar + (cell - cbar) * jnp.exp(-decay * dt)
        h_t = o_prev * jnp.tanh(c_t)

        # Recurrent projection only; the x projection + bias was hoisted outside.
        gates = pre_ref[e] + jnp.dot(h_t, wh, preferred_element_type=jnp.float32)

        sig = jax.nn.sigmoid(gates[:, :5 * H])  # i, f, o, i_bar, f_bar in one op
        i_g = sig[:, 0 * H:1 * H]
        f_g = sig[:, 1 * H:2 * H]
        o_g = sig[:, 2 * H:3 * H]
        ibar_g = sig[:, 3 * H:4 * H]
        fbar_g = sig[:, 4 * H:5 * H]
        z_g = jnp.tanh(gates[:, 5 * H:6 * H])
        delta_g = jax.nn.softplus(gates[:, 6 * H:7 * H])

        c_new = f_g * c_t + i_g * z_g
        cbar_new = fbar_g * cbar + ibar_g * z_g

        new_carry = jnp.concatenate([o_g, c_new, cbar_new, delta_g], axis=-1)
        out_ref[e] = new_carry
        return new_carry

    carry_scr[...] = lax.fori_loop(0, C, step, carry_scr[...], unroll=True)


def prepare_ctlstm_params(weight, bias, input_size):
    """Done ONCE per model (outside any event loop): gate-permute, split and
    transpose the PyTorch (7H, I+H) weight into Wx:(I,7H), Wh:(H,7H), b:(1,7H)."""
    f32 = jnp.float32
    H = weight.shape[0] // 7
    w = _reorder_gate_blocks(weight.astype(f32), H)            # (7H, I+H)
    b = _reorder_gate_blocks(bias.astype(f32), H).reshape(1, 7 * H)
    wx = w[:, :input_size].T                                   # (I, 7H)
    wh = w[:, input_size:].T                                   # (H, 7H)
    return wx, wh, b


def ctlstm_sequence_pallas(xs, dts, carry0, weight, bias, *, chunk=8):
    """Run the CTLSTM cell over T events in ONE fused pallas_call.

    xs:  (T, B, I) event embeddings, dts: (T, B) inter-event times.
    carry0: tuple (output, cell, cell_bar, decay_rate), each (B, H).
    Returns per-event carries: tuple of (T, B, H) arrays in the same order.
    """
    f32 = jnp.float32
    T, B, I = xs.shape
    H = weight.shape[0] // 7

    wx, wh, b = prepare_ctlstm_params(weight, bias, I)

    # Hoisted non-recurrent projection: one (T*B, I) @ (I, 7H) matmul.
    pre = (xs.astype(f32).reshape(T * B, I) @ wx + b).reshape(T, B, 7 * H)
    dt3 = dts.astype(f32).reshape(T, B, 1)

    # Chunk the event axis so per-grid-step overhead is amortized over C events.
    C = min(chunk, T)
    T_pad = ((T + C - 1) // C) * C
    if T_pad != T:
        # Zero-padded events (dt=0, pre=0) are numerically benign; outputs are
        # sliced away below.
        pre = jnp.pad(pre, ((0, T_pad - T), (0, 0), (0, 0)))
        dt3 = jnp.pad(dt3, ((0, T_pad - T), (0, 0), (0, 0)))

    carry0_packed = jnp.concatenate([c.astype(f32) for c in carry0], axis=-1)

    packed = pl.pallas_call(
        _ctlstm_seq_kernel,
        out_shape=jax.ShapeDtypeStruct((T_pad, B, 4 * H), f32),
        grid_spec=pltpu.PrefetchScalarGridSpec(
            num_scalar_prefetch=0,
            grid=(T_pad // C,),
            in_specs=[
                # pre-gates / dt streamed one chunk per grid step (double-buffered)
                pl.BlockSpec((C, B, 7 * H), lambda t: (t, 0, 0)),
                pl.BlockSpec((C, B, 1), lambda t: (t, 0, 0)),
                # initial carry + recurrent weight: constant index_map -> VMEM-resident
                pl.BlockSpec((B, 4 * H), lambda t: (0, 0)),
                pl.BlockSpec((H, 7 * H), lambda t: (0, 0)),
            ],
            out_specs=pl.BlockSpec((C, B, 4 * H), lambda t: (t, 0, 0)),
            scratch_shapes=[pltpu.VMEM((B, 4 * H), f32)],
        ),
        compiler_params=pltpu.CompilerParams(
            dimension_semantics=("arbitrary",)),   # sequential recurrence over events
    )(pre, dt3, carry0_packed, wh)

    packed = packed[:T]
    o = packed[:, :, 0 * H:1 * H]
    c = packed[:, :, 1 * H:2 * H]
    cbar = packed[:, :, 2 * H:3 * H]
    delta = packed[:, :, 3 * H:4 * H]
    return o, c, cbar, delta


def ctlstm_cell_pallas(x, dt, output, cell, cell_bar, decay_rate, weight, bias):
    """Single-event forward matching CTLSTMCell.forward (a T == 1 sequence)."""
    o, c, cbar, d = ctlstm_sequence_pallas(
        x[None], dt[None], (output, cell, cell_bar, decay_rate), weight, bias)
    return o[0], c[0], cbar[0], d[0]


# ----------------------------- pure-JAX references -----------------------------

def ctlstm_cell_ref(x, dt, output, cell, cell_bar, decay_rate, weight, bias):
    """Pure-JAX reference mirroring the PyTorch ctlstm_cell."""
    H = output.shape[-1]
    c_t = cell_bar + (cell - cell_bar) * jnp.exp(-decay_rate * dt[:, None])
    h_t = output * jnp.tanh(c_t)
    v = jnp.concatenate([x, h_t], axis=-1)
    gates = v @ weight.T + bias
    i, f, z, o, i_bar, f_bar, delta = [gates[:, k * H:(k + 1) * H] for k in range(7)]
    i, f, o = jax.nn.sigmoid(i), jax.nn.sigmoid(f), jax.nn.sigmoid(o)
    i_bar, f_bar = jax.nn.sigmoid(i_bar), jax.nn.sigmoid(f_bar)
    z = jnp.tanh(z)
    delta = jax.nn.softplus(delta)
    c_new = f * c_t + i * z
    cbar_new = f_bar * cell_bar + i_bar * z
    return o, c_new, cbar_new, delta


def ctlstm_sequence_ref(xs, dts, carry0, weight, bias):
    def step(carry, inp):
        x, dt = inp
        new = ctlstm_cell_ref(x, dt, *carry, weight, bias)
        return new, new
    _, outs = jax.lax.scan(step, carry0, (xs, dts))
    return outs  # tuple of (T, B, H)


if __name__ == "__main__":
    # Small shapes implied by the module: batch=8, input_size=16, hidden=32.
    # T=12 exercises the chunk-padding path (chunk=8 -> padded to 16, 2 grid steps).
    B, I, H, T = 8, 16, 32, 12
    key = jax.random.PRNGKey(0)
    k_w, k_b, k_x, k_dt, k_o, k_c, k_cb, k_d = jax.random.split(key, 8)

    # Deterministic init matching nn.init.kaiming_normal_(a=sqrt(5)) and uniform bias.
    fan_in = I + H
    gain = math.sqrt(2.0 / (1.0 + 5.0))
    w_std = gain / math.sqrt(fan_in)
    weight = w_std * jax.random.normal(k_w, (7 * H, I + H), dtype=jnp.float32)
    bound = 1.0 / math.sqrt(fan_in)
    bias = jax.random.uniform(k_b, (7 * H,), minval=-bound, maxval=bound,
                              dtype=jnp.float32)

    # Example event stream + a nonzero carry to exercise the decay path.
    xs = jax.random.normal(k_x, (T, B, I), dtype=jnp.float32)
    dts = jax.random.uniform(k_dt, (T, B), minval=0.0, maxval=2.0, dtype=jnp.float32)
    carry0 = (
        jax.random.uniform(k_o, (B, H), dtype=jnp.float32),                    # output
        jax.random.normal(k_c, (B, H), dtype=jnp.float32),                     # cell
        jax.random.normal(k_cb, (B, H), dtype=jnp.float32),                    # cell_bar
        jax.random.uniform(k_d, (B, H), minval=0.0, maxval=1.0,
                           dtype=jnp.float32),                                 # decay_rate
    )

    # Fused sequence kernel (one pallas_call for all T events).
    outs = ctlstm_sequence_pallas(xs, dts, carry0, weight, bias)
    outs = jax.block_until_ready(outs)
    ref_outs = ctlstm_sequence_ref(xs, dts, carry0, weight, bias)
    for got, want in zip(outs, ref_outs):
        assert got.shape == (T, B, H) and got.dtype == jnp.float32
        assert jnp.allclose(got, want, atol=5e-4, rtol=5e-4)

    # Single-event forward (exact CTLSTMCell.forward semantics).
    step_out = ctlstm_cell_pallas(xs[0], dts[0], *carry0, weight, bias)
    step_out = jax.block_until_ready(step_out)
    step_ref = ctlstm_cell_ref(xs[0], dts[0], *carry0, weight, bias)
    for got, want in zip(step_out, step_ref):
        assert got.shape == (B, H) and got.dtype == jnp.float32
        assert jnp.allclose(got, want, atol=5e-4, rtol=5e-4)

    print("KERNEL_OK")
</pallas_src>

<mosaic_0001>
module attributes {stable_mosaic.version = 11 : i64} {
  func.func @_ctlstm_seq_kernel(%arg0: i32, %arg1: memref<8x8x224xf32, #tpu.memory_space<vmem>>, %arg2: memref<8x8x1xf32, #tpu.memory_space<vmem>>, %arg3: memref<8x128xf32, #tpu.memory_space<vmem>>, %arg4: memref<32x224xf32, #tpu.memory_space<vmem>>, %arg5: memref<8x8x128xf32, #tpu.memory_space<vmem>>, %arg6: memref<8x128xf32, #tpu.memory_space<vmem>>) attributes {dimension_semantics = [#tpu.dimension_semantics<arbitrary>], iteration_bounds = array<i64: 2>, scalar_prefetch = 0 : i64, scratch_operands = 1 : i64, tpu.core_type = #tpu.core_type<tc>, window_params = [{transform_indices = @transform_0, window_bounds = array<i64: 8, 8, 224>}, {transform_indices = @transform_1, window_bounds = array<i64: 8, 8, 1>}, {pipeline_mode = #tpu.pipeline_mode<synchronous>, transform_indices = @transform_2, window_bounds = array<i64: 8, 128>}, {pipeline_mode = #tpu.pipeline_mode<synchronous>, transform_indices = @transform_3, window_bounds = array<i64: 32, 224>}, {transform_indices = @transform_4, window_bounds = array<i64: 8, 8, 128>}]} {
    %c0_i32 = arith.constant 0 : i32
    %0 = arith.cmpi eq, %arg0, %c0_i32 : i32
    %1 = arith.extui %0 : i1 to i32
    %c0_i32_0 = arith.constant 0 : i32
    %2 = arith.cmpi ne, %1, %c0_i32_0 : i32
    scf.if %2 {
      %c0_94 = arith.constant 0 : index
      %c0_95 = arith.constant 0 : index
      %494 = vector.load %arg3[%c0_94, %c0_95] : memref<8x128xf32, #tpu.memory_space<vmem>>, vector<8x128xf32>
      %c0_96 = arith.constant 0 : index
      %c0_97 = arith.constant 0 : index
      %495 = vector.load %arg6[%c0_96, %c0_97] : memref<8x128xf32, #tpu.memory_space<vmem>>, vector<8x128xf32>
      tpu.vector_store %arg6[%c0_96, %c0_97], %494 {strides = array<i32>} : memref<8x128xf32, #tpu.memory_space<vmem>>, vector<8x128xf32>,
    } else {
    }
    %c0 = arith.constant 0 : index
    %c0_1 = arith.constant 0 : index
    %3 = vector.load %arg4[%c0, %c0_1] : memref<32x224xf32, #tpu.memory_space<vmem>>, vector<32x224xf32>
    %c0_2 = arith.constant 0 : index
    %c0_3 = arith.constant 0 : index
    %4 = vector.load %arg6[%c0_2, %c0_3] : memref<8x128xf32, #tpu.memory_space<vmem>>, vector<8x128xf32>
    %c0_i32_4 = arith.constant 0 : i32
    %5 = vector.extract_strided_slice %4 {offsets = [0, 0], sizes = [8, 32], strides = [1, 1]} : vector<8x128xf32> to vector<8x32xf32>
    %6 = vector.extract_strided_slice %4 {offsets = [0, 32], sizes = [8, 32], strides = [1, 1]} : vector<8x128xf32> to vector<8x32xf32>
    %7 = vector.extract_strided_slice %4 {offsets = [0, 64], sizes = [8, 32], strides = [1, 1]} : vector<8x128xf32> to vector<8x32xf32>
    %8 = vector.extract_strided_slice %4 {offsets = [0, 96], sizes = [8, 32], strides = [1, 1]} : vector<8x128xf32> to vector<8x32xf32>
    %9 = arith.index_cast %c0_i32_4 : i32 to index
    %c0_5 = arith.constant 0 : index
    %c0_6 = arith.constant 0 : index
    %10 = vector.load %arg2[%9, %c0_5, %c0_6] : memref<8x8x1xf32, #tpu.memory_space<vmem>>, vector<1x8x1xf32>
    %11 = vector.shape_cast %10 : vector<1x8x1xf32> to vector<8x1xf32>
    %12 = arith.subf %6, %7 : vector<8x32xf32>
    %cst = arith.constant 0.000000e+00 : f32
    %13 = vector.broadcast %cst : f32 to vector<8x32xf32>
    %14 = arith.subf %13, %8 : vector<8x32xf32>
    %15 = vector.broadcast %11 : vector<8x1xf32> to vector<8x32xf32>
    %16 = arith.mulf %14, %15 : vector<8x32xf32>
    %17 = math.exp %16 : vector<8x32xf32>
    %18 = arith.mulf %12, %17 : vector<8x32xf32>
    %19 = arith.addf %7, %18 : vector<8x32xf32>
    %20 = math.tanh %19 : vector<8x32xf32>
    %21 = arith.mulf %5, %20 : vector<8x32xf32>
    %22 = arith.index_cast %c0_i32_4 : i32 to index
    %c0_7 = arith.constant 0 : index
    %c0_8 = arith.constant 0 : index
    %23 = vector.load %arg1[%22, %c0_7, %c0_8] : memref<8x8x224xf32, #tpu.memory_space<vmem>>, vector<1x8x224xf32>
    %24 = vector.shape_cast %23 : vector<1x8x224xf32> to vector<8x224xf32>
    %cst_9 = arith.constant dense<0.000000e+00> : vector<8x224xf32>
    %25 = tpu.matmul %21, %3, %cst_9 {dimension_numbers = #tpu.dot_dimension_numbers<[1], [0], [0], [1], [0, 0, 1, 1], [], []>} : vector<8x32xf32>, vector<32x224xf32>, vector<8x224xf32> -> vector<8x224xf32>
    %26 = arith.addf %24, %25 : vector<8x224xf32>
    %27 = vector.extract_strided_slice %26 {offsets = [0, 0], sizes = [8, 160], strides = [1, 1]} : vector<8x224xf32> to vector<8x160xf32>
    %28 = arith.negf %27 : vector<8x160xf32>
    %29 = math.exp %28 : vector<8x160xf32>
    %cst_10 = arith.constant 1.000000e+00 : f32
    %30 = vector.broadcast %cst_10 : f32 to vector<8x160xf32>
    %31 = arith.addf %30, %29 : vector<8x160xf32>
    %32 = arith.divf %30, %31 : vector<8x160xf32>
    %33 = vector.extract_strided_slice %32 {offsets = [0, 0], sizes = [8, 32], strides = [1, 1]} : vector<8x160xf32> to vector<8x32xf32>
    %34 = vector.extract_strided_slice %32 {offsets = [0, 32], sizes = [8, 32], strides = [1, 1]} : vector<8x160xf32> to vector<8x32xf32>
    %35 = vector.extract_strided_slice %32 {offsets = [0, 64], sizes = [8, 32], strides = [1, 1]} : vector<8x160xf32> to vector<8x32xf32>
    %36 = vector.extract_strided_slice %32 {offsets = [0, 96], sizes = [8, 32], strides = [1, 1]} : vector<8x160xf32> to vector<8x32xf32>
    %37 = vector.extract_strided_slice %32 {offsets = [0, 128], sizes = [8, 32], strides = [1, 1]} : vector<8x160xf32> to vector<8x32xf32>
    %38 = vector.extract_strided_slice %26 {offsets = [0, 160], sizes = [8, 32], strides = [1, 1]} : vector<8x224xf32> to vector<8x32xf32>
    %39 = math.tanh %38 : vector<8x32xf32>
    %40 = vector.extract_strided_slice %26 {offsets = [0, 192], sizes = [8, 32], strides = [1, 1]} : vector<8x224xf32> to vector<8x32xf32>
    %cst_11 = arith.constant 0.000000e+00 : f32
    %41 = vector.broadcast %cst_11 : f32 to vector<8x32xf32>
    %42 = arith.maximumf %40, %41 : vector<8x32xf32>
    %43 = vector.broadcast %cst_11 : f32 to vector<8x32xf32>
    %44 = arith.subf %40, %43 : vector<8x32xf32>
    %45 = arith.cmpf one, %44, %44 : vector<8x32xf32>
    %46 = vector.broadcast %cst_11 : f32 to vector<8x32xf32>
    %47 = arith.addf %40, %46 : vector<8x32xf32>
    %48 = math.absf %44 : vector<8x32xf32>
    %cst_12 = arith.constant 0.000000e+00 : f32
    %49 = vector.broadcast %cst_12 : f32 to vector<8x32xf32>
    %50 = arith.subf %49, %48 : vector<8x32xf32>
    %51 = math.exp %50 : vector<8x32xf32>
    %52 = math.log1p %51 : vector<8x32xf32>
    %53 = arith.addf %42, %52 : vector<8x32xf32>
    %54 = arith.select %45, %47, %53 : vector<8x32xi1>, vector<8x32xf32>
    %55 = arith.mulf %34, %19 : vector<8x32xf32>
    %56 = arith.mulf %33, %39 : vector<8x32xf32>
    %57 = arith.addf %55, %56 : vector<8x32xf32>
    %58 = arith.mulf %37, %7 : vector<8x32xf32>
    %59 = arith.mulf %36, %39 : vector<8x32xf32>
    %60 = arith.addf %58, %59 : vector<8x32xf32>
    %61 = tpu.concatenate %35, %57, %60, %54 in 1 : vector<8x32xf32>, vector<8x32xf32>, vector<8x32xf32>, vector<8x32xf32> -> vector<8x128xf32>
    %62 = arith.index_cast %c0_i32_4 : i32 to index
    %c0_13 = arith.constant 0 : index
    %c0_14 = arith.constant 0 : index
    %63 = vector.load %arg5[%62, %c0_13, %c0_14] : memref<8x8x128xf32, #tpu.memory_space<vmem>>, vector<1x8x128xf32>
    %64 = vector.shape_cast %63 : vector<1x8x128xf32> to vector<8x128xf32>
    %65 = vector.shape_cast %61 : vector<8x128xf32> to vector<1x8x128xf32>
    tpu.vector_store %arg5[%62, %c0_13, %c0_14], %65 {strides = array<i32>} : memref<8x8x128xf32, #tpu.memory_space<vmem>>, vector<1x8x128xf32>,
    %c1_i32 = arith.constant 1 : i32
    %66 = vector.extract_strided_slice %61 {offsets = [0, 0], sizes = [8, 32], strides = [1, 1]} : vector<8x128xf32> to vector<8x32xf32>
    %67 = vector.extract_strided_slice %61 {offsets = [0, 32], sizes = [8, 32], strides = [1, 1]} : vector<8x128xf32> to vector<8x32xf32>
    %68 = vector.extract_strided_slice %61 {offsets = [0, 64], sizes = [8, 32], strides = [1, 1]} : vector<8x128xf32> to vector<8x32xf32>
    %69 = vector.extract_strided_slice %61 {offsets = [0, 96], sizes = [8, 32], strides = [1, 1]} : vector<8x128xf32> to vector<8x32xf32>
    %70 = arith.index_cast %c1_i32 : i32 to index
    %c0_15 = arith.constant 0 : index
    %c0_16 = arith.constant 0 : index
    %71 = vector.load %arg2[%70, %c0_15, %c0_16] : memref<8x8x1xf32, #tpu.memory_space<vmem>>, vector<1x8x1xf32>
    %72 = vector.shape_cast %71 : vector<1x8x1xf32> to vector<8x1xf32>
    %73 = arith.subf %67, %68 : vector<8x32xf32>
    %cst_17 = arith.constant 0.000000e+00 : f32
    %74 = vector.broadcast %cst_17 : f32 to vector<8x32xf32>
    %75 = arith.subf %74, %69 : vector<8x32xf32>
    %76 = vector.broadcast %72 : vector<8x1xf32> to vector<8x32xf32>
    %77 = arith.mulf %75, %76 : vector<8x32xf32>
    %78 = math.exp %77 : vector<8x32xf32>
    %79 = arith.mulf %73, %78 : vector<8x32xf32>
    %80 = arith.addf %68, %79 : vector<8x32xf32>
    %81 = math.tanh %80 : vector<8x32xf32>
    %82 = arith.mulf %66, %81 : vector<8x32xf32>
    %83 = arith.index_cast %c1_i32 : i32 to index
    %c0_18 = arith.constant 0 : index
    %c0_19 = arith.constant 0 : index
    %84 = vector.load %arg1[%83, %c0_18, %c0_19] : memref<8x8x224xf32, #tpu.memory_space<vmem>>, vector<1x8x224xf32>
    %85 = vector.shape_cast %84 : vector<1x8x224xf32> to vector<8x224xf32>
    %cst_20 = arith.constant dense<0.000000e+00> : vector<8x224xf32>
    %86 = tpu.matmul %82, %3, %cst_20 {dimension_numbers = #tpu.dot_dimension_numbers<[1], [0], [0], [1], [0, 0, 1, 1], [], []>} : vector<8x32xf32>, vector<32x224xf32>, vector<8x224xf32> -> vector<8x224xf32>
    %87 = arith.addf %85, %86 : vector<8x224xf32>
    %88 = vector.extract_strided_slice %87 {offsets = [0, 0], sizes = [8, 160], strides = [1, 1]} : vector<8x224xf32> to vector<8x160xf32>
    %89 = arith.negf %88 : vector<8x160xf32>
    %90 = math.exp %89 : vector<8x160xf32>
    %cst_21 = arith.constant 1.000000e+00 : f32
    %91 = vector.broadcast %cst_21 : f32 to vector<8x160xf32>
    %92 = arith.addf %91, %90 : vector<8x160xf32>
    %93 = arith.divf %91, %92 : vector<8x160xf32>
    %94 = vector.extract_strided_slice %93 {offsets = [0, 0], sizes = [8, 32], strides = [1, 1]} : vector<8x160xf32> to vector<8x32xf32>
    %95 = vector.extract_strided_slice %93 {offsets = [0, 32], sizes = [8, 32], strides = [1, 1]} : vector<8x160xf32> to vector<8x32xf32>
    %96 = vector.extract_strided_slice %93 {offsets = [0, 64], sizes = [8, 32], strides = [1, 1]} : vector<8x160xf32> to vector<8x32xf32>
    %97 = vector.extract_strided_slice %93 {offsets = [0, 96], sizes = [8, 32], strides = [1, 1]} : vector<8x160xf32> to vector<8x32xf32>
    %98 = vector.extract_strided_slice %93 {offsets = [0, 128], sizes = [8, 32], strides = [1, 1]} : vector<8x160xf32> to vector<8x32xf32>
    %99 = vector.extract_strided_slice %87 {offsets = [0, 160], sizes = [8, 32], strides = [1, 1]} : vector<8x224xf32> to vector<8x32xf32>
    %100 = math.tanh %99 : vector<8x32xf32>
    %101 = vector.extract_strided_slice %87 {offsets = [0, 192], sizes = [8, 32], strides = [1, 1]} : vector<8x224xf32> to vector<8x32xf32>
    %cst_22 = arith.constant 0.000000e+00 : f32
    %102 = vector.broadcast %cst_22 : f32 to vector<8x32xf32>
    %103 = arith.maximumf %101, %102 : vector<8x32xf32>
    %104 = vector.broadcast %cst_22 : f32 to vector<8x32xf32>
    %105 = arith.subf %101, %104 : vector<8x32xf32>
    %106 = arith.cmpf one, %105, %105 : vector<8x32xf32>
    %107 = vector.broadcast %cst_22 : f32 to vector<8x32xf32>
    %108 = arith.addf %101, %107 : vector<8x32xf32>
    %109 = math.absf %105 : vector<8x32xf32>
    %cst_23 = arith.constant 0.000000e+00 : f32
    %110 = vector.broadcast %cst_23 : f32 to vector<8x32xf32>
    %111 = arith.subf %110, %109 : vector<8x32xf32>
    %112 = math.exp %111 : vector<8x32xf32>
    %113 = math.log1p %112 : vector<8x32xf32>
    %114 = arith.addf %103, %113 : vector<8x32xf32>
    %115 = arith.select %106, %108, %114 : vector<8x32xi1>, vector<8x32xf32>
    %116 = arith.mulf %95, %80 : vector<8x32xf32>
    %117 = arith.mulf %94, %100 : vector<8x32xf32>
    %118 = arith.addf %116, %117 : vector<8x32xf32>
    %119 = arith.mulf %98, %68 : vector<8x32xf32>
    %120 = arith.mulf %97, %100 : vector<8x32xf32>
    %121 = arith.addf %119, %120 : vector<8x32xf32>
    %122 = tpu.concatenate %96, %118, %121, %115 in 1 : vector<8x32xf32>, vector<8x32xf32>, vector<8x32xf32>, vector<8x32xf32> -> vector<8x128xf32>
    %123 = arith.index_cast %c1_i32 : i32 to index
    %c0_24 = arith.constant 0 : index
    %c0_25 = arith.constant 0 : index
    %124 = vector.load %arg5[%123, %c0_24, %c0_25] : memref<8x8x128xf32, #tpu.memory_space<vmem>>, vector<1x8x128xf32>
    %125 = vector.shape_cast %124 : vector<1x8x128xf32> to vector<8x128xf32>
    %126 = vector.shape_cast %122 : vector<8x128xf32> to vector<1x8x128xf32>
    tpu.vector_store %arg5[%123, %c0_24, %c0_25], %126 {strides = array<i32>} : memref<8x8x128xf32, #tpu.memory_space<vmem>>, vector<1x8x128xf32>,
    %c2_i32 = arith.constant 2 : i32
    %127 = vector.extract_strided_slice %122 {offsets = [0, 0], sizes = [8, 32], strides = [1, 1]} : vector<8x128xf32> to vector<8x32xf32>
    %128 = vector.extract_strided_slice %122 {offsets = [0, 32], sizes = [8, 32], strides = [1, 1]} : vector<8x128xf32> to vector<8x32xf32>
    %129 = vector.extract_strided_slice %122 {offsets = [0, 64], sizes = [8, 32], strides = [1, 1]} : vector<8x128xf32> to vector<8x32xf32>
    %130 = vector.extract_strided_slice %122 {offsets = [0, 96], sizes = [8, 32], strides = [1, 1]} : vector<8x128xf32> to vector<8x32xf32>
    %131 = arith.index_cast %c2_i32 : i32 to index
    %c0_26 = arith.constant 0 : index
    %c0_27 = arith.constant 0 : index
    %132 = vector.load %arg2[%131, %c0_26, %c0_27] : memref<8x8x1xf32, #tpu.memory_space<vmem>>, vector<1x8x1xf32>
    %133 = vector.shape_cast %132 : vector<1x8x1xf32> to vector<8x1xf32>
    %134 = arith.subf %128, %129 : vector<8x32xf32>
    %cst_28 = arith.constant 0.000000e+00 : f32
    %135 = vector.broadcast %cst_28 : f32 to vector<8x32xf32>
    %136 = arith.subf %135, %130 : vector<8x32xf32>
    %137 = vector.broadcast %133 : vector<8x1xf32> to vector<8x32xf32>
    %138 = arith.mulf %136, %137 : vector<8x32xf32>
    %139 = math.exp %138 : vector<8x32xf32>
    %140 = arith.mulf %134, %139 : vector<8x32xf32>
    %141 = arith.addf %129, %140 : vector<8x32xf32>
    %142 = math.tanh %141 : vector<8x32xf32>
    %143 = arith.mulf %127, %142 : vector<8x32xf32>
    %144 = arith.index_cast %c2_i32 : i32 to index
    %c0_29 = arith.constant 0 : index
    %c0_30 = arith.constant 0 : index
    %145 = vector.load %arg1[%144, %c0_29, %c0_30] : memref<8x8x224xf32, #tpu.memory_space<vmem>>, vector<1x8x224xf32>
    %146 = vector.shape_cast %145 : vector<1x8x224xf32> to vector<8x224xf32>
    %cst_31 = arith.constant dense<0.000000e+00> : vector<8x224xf32>
    %147 = tpu.matmul %143, %3, %cst_31 {dimension_numbers = #tpu.dot_dimension_numbers<[1], [0], [0], [1], [0, 0, 1, 1], [], []>} : vector<8x32xf32>, vector<32x224xf32>, vector<8x224xf32> -> vector<8x224xf32>
    %148 = arith.addf %146, %147 : vector<8x224xf32>
    %149 = vector.extract_strided_slice %148 {offsets = [0, 0], sizes = [8, 160], strides = [1, 1]} : vector<8x224xf32> to vector<8x160xf32>
    %150 = arith.negf %149 : vector<8x160xf32>
    %151 = math.exp %150 : vector<8x160xf32>
    %cst_32 = arith.constant 1.000000e+00 : f32
    %152 = vector.broadcast %cst_32 : f32 to vector<8x160xf32>
    %153 = arith.addf %152, %151 : vector<8x160xf32>
    %154 = arith.divf %152, %153 : vector<8x160xf32>
    %155 = vector.extract_strided_slice %154 {offsets = [0, 0], sizes = [8, 32], strides = [1, 1]} : vector<8x160xf32> to vector<8x32xf32>
    %156 = vector.extract_strided_slice %154 {offsets = [0, 32], sizes = [8, 32], strides = [1, 1]} : vector<8x160xf32> to vector<8x32xf32>
    %157 = vector.extract_strided_slice %154 {offsets = [0, 64], sizes = [8, 32], strides = [1, 1]} : vector<8x160xf32> to vector<8x32xf32>
    %158 = vector.extract_strided_slice %154 {offsets = [0, 96], sizes = [8, 32], strides = [1, 1]} : vector<8x160xf32> to vector<8x32xf32>
    %159 = vector.extract_strided_slice %154 {offsets = [0, 128], sizes = [8, 32], strides = [1, 1]} : vector<8x160xf32> to vector<8x32xf32>
    %160 = vector.extract_strided_slice %148 {offsets = [0, 160], sizes = [8, 32], strides = [1, 1]} : vector<8x224xf32> to vector<8x32xf32>
    %161 = math.tanh %160 : vector<8x32xf32>
    %162 = vector.extract_strided_slice %148 {offsets = [0, 192], sizes = [8, 32], strides = [1, 1]} : vector<8x224xf32> to vector<8x32xf32>
    %cst_33 = arith.constant 0.000000e+00 : f32
    %163 = vector.broadcast %cst_33 : f32 to vector<8x32xf32>
    %164 = arith.maximumf %162, %163 : vector<8x32xf32>
    %165 = vector.broadcast %cst_33 : f32 to vector<8x32xf32>
    %166 = arith.subf %162, %165 : vector<8x32xf32>
    %167 = arith.cmpf one, %166, %166 : vector<8x32xf32>
    %168 = vector.broadcast %cst_33 : f32 to vector<8x32xf32>
    %169 = arith.addf %162, %168 : vector<8x32xf32>
    %170 = math.absf %166 : vector<8x32xf32>
    %cst_34 = arith.constant 0.000000e+00 : f32
    %171 = vector.broadcast %cst_34 : f32 to vector<8x32xf32>
    %172 = arith.subf %171, %170 : vector<8x32xf32>
    %173 = math.exp %172 : vector<8x32xf32>
    %174 = math.log1p %173 : vector<8x32xf32>
    %175 = arith.addf %164, %174 : vector<8x32xf32>
    %176 = arith.select %167, %169, %175 : vector<8x32xi1>, vector<8x32xf32>
    %177 = arith.mulf %156, %141 : vector<8x32xf32>
    %178 = arith.mulf %155, %161 : vector<8x32xf32>
    %179 = arith.addf %177, %178 : vector<8x32xf32>
    %180 = arith.mulf %159, %129 : vector<8x32xf32>
    %181 = arith.mulf %158, %161 : vector<8x32xf32>
    %182 = arith.addf %180, %181 : vector<8x32xf32>
    %183 = tpu.concatenate %157, %179, %182, %176 in 1 : vector<8x32xf32>, vector<8x32xf32>, vector<8x32xf32>, vector<8x32xf32> -> vector<8x128xf32>
    %184 = arith.index_cast %c2_i32 : i32 to index
    %c0_35 = arith.constant 0 : index
    %c0_36 = arith.constant 0 : index
    %185 = vector.load %arg5[%184, %c0_35, %c0_36] : memref<8x8x128xf32, #tpu.memory_space<vmem>>, vector<1x8x128xf32>
    %186 = vector.shape_cast %185 : vector<1x8x128xf32> to vector<8x128xf32>
    %187 = vector.shape_cast %183 : vector<8x128xf32> to vector<1x8x128xf32>
    tpu.vector_store %arg5[%184, %c0_35, %c0_36], %187 {strides = array<i32>} : memref<8x8x128xf32, #tpu.memory_space<vmem>>, vector<1x8x128xf32>,
    %c3_i32 = arith.constant 3 : i32
    %188 = vector.extract_strided_slice %183 {offsets = [0, 0], sizes = [8, 32], strides = [1, 1]} : vector<8x128xf32> to vector<8x32xf32>
    %189 = vector.extract_strided_slice %183 {offsets = [0, 32], sizes = [8, 32], strides = [1, 1]} : vector<8x128xf32> to vector<8x32xf32>
    %190 = vector.extract_strided_slice %183 {offsets = [0, 64], sizes = [8, 32], strides = [1, 1]} : vector<8x128xf32> to vector<8x32xf32>
    %191 = vector.extract_strided_slice %183 {offsets = [0, 96], sizes = [8, 32], strides = [1, 1]} : vector<8x128xf32> to vector<8x32xf32>
    %192 = arith.index_cast %c3_i32 : i32 to index
    %c0_37 = arith.constant 0 : index
    %c0_38 = arith.constant 0 : index
    %193 = vector.load %arg2[%192, %c0_37, %c0_38] : memref<8x8x1xf32, #tpu.memory_space<vmem>>, vector<1x8x1xf32>
    %194 = vector.shape_cast %193 : vector<1x8x1xf32> to vector<8x1xf32>
    %195 = arith.subf %189, %190 : vector<8x32xf32>
    %cst_39 = arith.constant 0.000000e+00 : f32
    %196 = vector.broadcast %cst_39 : f32 to vector<8x32xf32>
    %197 = arith.subf %196, %191 : vector<8x32xf32>
    %198 = vector.broadcast %194 : vector<8x1xf32> to vector<8x32xf32>
    %199 = arith.mulf %197, %198 : vector<8x32xf32>
    %200 = math.exp %199 : vector<8x32xf32>
    %201 = arith.mulf %195, %200 : vector<8x32xf32>
    %202 = arith.addf %190, %201 : vector<8x32xf32>
    %203 = math.tanh %202 : vector<8x32xf32>
    %204 = arith.mulf %188, %203 : vector<8x32xf32>
    %205 = arith.index_cast %c3_i32 : i32 to index
    %c0_40 = arith.constant 0 : index
    %c0_41 = arith.constant 0 : index
    %206 = vector.load %arg1[%205, %c0_40, %c0_41] : memref<8x8x224xf32, #tpu.memory_space<vmem>>, vector<1x8x224xf32>
    %207 = vector.shape_cast %206 : vector<1x8x224xf32> to vector<8x224xf32>
    %cst_42 = arith.constant dense<0.000000e+00> : vector<8x224xf32>
    %208 = tpu.matmul %204, %3, %cst_42 {dimension_numbers = #tpu.dot_dimension_numbers<[1], [0], [0], [1], [0, 0, 1, 1], [], []>} : vector<8x32xf32>, vector<32x224xf32>, vector<8x224xf32> -> vector<8x224xf32>
    %209 = arith.addf %207, %208 : vector<8x224xf32>
    %210 = vector.extract_strided_slice %209 {offsets = [0, 0], sizes = [8, 160], strides = [1, 1]} : vector<8x224xf32> to vector<8x160xf32>
    %211 = arith.negf %210 : vector<8x160xf32>
    %212 = math.exp %211 : vector<8x160xf32>
    %cst_43 = arith.constant 1.000000e+00 : f32
    %213 = vector.broadcast %cst_43 : f32 to vector<8x160xf32>
    %214 = arith.addf %213, %212 : vector<8x160xf32>
    %215 = arith.divf %213, %214 : vector<8x160xf32>
    %216 = vector.extract_strided_slice %215 {offsets = [0, 0], sizes = [8, 32], strides = [1, 1]} : vector<8x160xf32> to vector<8x32xf32>
    %217 = vector.extract_strided_slice %215 {offsets = [0, 32], sizes = [8, 32], strides = [1, 1]} : vector<8x160xf32> to vector<8x32xf32>
    %218 = vector.extract_strided_slice %215 {offsets = [0, 64], sizes = [8, 32], strides = [1, 1]} : vector<8x160xf32> to vector<8x32xf32>
    %219 = vector.extract_strided_slice %215 {offsets = [0, 96], sizes = [8, 32], strides = [1, 1]} : vector<8x160xf32> to vector<8x32xf32>
    %220 = vector.extract_strided_slice %215 {offsets = [0, 128], sizes = [8, 32], strides = [1, 1]} : vector<8x160xf32> to vector<8x32xf32>
    %221 = vector.extract_strided_slice %209 {offsets = [0, 160], sizes = [8, 32], strides = [1, 1]} : vector<8x224xf32> to vector<8x32xf32>
    %222 = math.tanh %221 : vector<8x32xf32>
    %223 = vector.extract_strided_slice %209 {offsets = [0, 192], sizes = [8, 32], strides = [1, 1]} : vector<8x224xf32> to vector<8x32xf32>
    %cst_44 = arith.constant 0.000000e+00 : f32
    %224 = vector.broadcast %cst_44 : f32 to vector<8x32xf32>
    %225 = arith.maximumf %223, %224 : vector<8x32xf32>
    %226 = vector.broadcast %cst_44 : f32 to vector<8x32xf32>
    %227 = arith.subf %223, %226 : vector<8x32xf32>
    %228 = arith.cmpf one, %227, %227 : vector<8x32xf32>
    %229 = vector.broadcast %cst_44 : f32 to vector<8x32xf32>
    %230 = arith.addf %223, %229 : vector<8x32xf32>
    %231 = math.absf %227 : vector<8x32xf32>
    %cst_45 = arith.constant 0.000000e+00 : f32
    %232 = vector.broadcast %cst_45 : f32 to vector<8x32xf32>
    %233 = arith.subf %232, %231 : vector<8x32xf32>
    %234 = math.exp %233 : vector<8x32xf32>
    %235 = math.log1p %234 : vector<8x32xf32>
    %236 = arith.addf %225, %235 : vector<8x32xf32>
    %237 = arith.select %228, %230, %236 : vector<8x32xi1>, vector<8x32xf32>
    %238 = arith.mulf %217, %202 : vector<8x32xf32>
    %239 = arith.mulf %216, %222 : vector<8x32xf32>
    %240 = arith.addf %238, %239 : vector<8x32xf32>
    %241 = arith.mulf %220, %190 : vector<8x32xf32>
    %242 = arith.mulf %219, %222 : vector<8x32xf32>
    %243 = arith.addf %241, %242 : vector<8x32xf32>
    %244 = tpu.concatenate %218, %240, %243, %237 in 1 : vector<8x32xf32>, vector<8x32xf32>, vector<8x32xf32>, vector<8x32xf32> -> vector<8x128xf32>
    %245 = arith.index_cast %c3_i32 : i32 to index
    %c0_46 = arith.constant 0 : index
    %c0_47 = arith.constant 0 : index
    %246 = vector.load %arg5[%245, %c0_46, %c0_47] : memref<8x8x128xf32, #tpu.memory_space<vmem>>, vector<1x8x128xf32>
    %247 = vector.shape_cast %246 : vector<1x8x128xf32> to vector<8x128xf32>
    %248 = vector.shape_cast %244 : vector<8x128xf32> to vector<1x8x128xf32>
    tpu.vector_store %arg5[%245, %c0_46, %c0_47], %248 {strides = array<i32>} : memref<8x8x128xf32, #tpu.memory_space<vmem>>, vector<1x8x128xf32>,
    %c4_i32 = arith.constant 4 : i32
    %249 = vector.extract_strided_slice %244 {offsets = [0, 0], sizes = [8, 32], strides = [1, 1]} : vector<8x128xf32> to vector<8x32xf32>
    %250 = vector.extract_strided_slice %244 {offsets = [0, 32], sizes = [8, 32], strides = [1, 1]} : vector<8x128xf32> to vector<8x32xf32>
    %251 = vector.extract_strided_slice %244 {offsets = [0, 64], sizes = [8, 32], strides = [1, 1]} : vector<8x128xf32> to vector<8x32xf32>
    %252 = vector.extract_strided_slice %244 {offsets = [0, 96], sizes = [8, 32], strides = [1, 1]} : vector<8x128xf32> to vector<8x32xf32>
    %253 = arith.index_cast %c4_i32 : i32 to index
    %c0_48 = arith.constant 0 : index
    %c0_49 = arith.constant 0 : index
    %254 = vector.load %arg2[%253, %c0_48, %c0_49] : memref<8x8x1xf32, #tpu.memory_space<vmem>>, vector<1x8x1xf32>
    %255 = vector.shape_cast %254 : vector<1x8x1xf32> to vector<8x1xf32>
    %256 = arith.subf %250, %251 : vector<8x32xf32>
    %cst_50 = arith.constant 0.000000e+00 : f32
    %257 = vector.broadcast %cst_50 : f32 to vector<8x32xf32>
    %258 = arith.subf %257, %252 : vector<8x32xf32>
    %259 = vector.broadcast %255 : vector<8x1xf32> to vector<8x32xf32>
    %260 = arith.mulf %258, %259 : vector<8x32xf32>
    %261 = math.exp %260 : vector<8x32xf32>
    %262 = arith.mulf %256, %261 : vector<8x32xf32>
    %263 = arith.addf %251, %262 : vector<8x32xf32>
    %264 = math.tanh %263 : vector<8x32xf32>
    %265 = arith.mulf %249, %264 : vector<8x32xf32>
    %266 = arith.index_cast %c4_i32 : i32 to index
    %c0_51 = arith.constant 0 : index
    %c0_52 = arith.constant 0 : index
    %267 = vector.load %arg1[%266, %c0_51, %c0_52] : memref<8x8x224xf32, #tpu.memory_space<vmem>>, vector<1x8x224xf32>
    %268 = vector.shape_cast %267 : vector<1x8x224xf32> to vector<8x224xf32>
    %cst_53 = arith.constant dense<0.000000e+00> : vector<8x224xf32>
    %269 = tpu.matmul %265, %3, %cst_53 {dimension_numbers = #tpu.dot_dimension_numbers<[1], [0], [0], [1], [0, 0, 1, 1], [], []>} : vector<8x32xf32>, vector<32x224xf32>, vector<8x224xf32> -> vector<8x224xf32>
    %270 = arith.addf %268, %269 : vector<8x224xf32>
    %271 = vector.extract_strided_slice %270 {offsets = [0, 0], sizes = [8, 160], strides = [1, 1]} : vector<8x224xf32> to vector<8x160xf32>
    %272 = arith.negf %271 : vector<8x160xf32>
    %273 = math.exp %272 : vector<8x160xf32>
    %cst_54 = arith.constant 1.000000e+00 : f32
    %274 = vector.broadcast %cst_54 : f32 to vector<8x160xf32>
    %275 = arith.addf %274, %273 : vector<8x160xf32>
    %276 = arith.divf %274, %275 : vector<8x160xf32>
    %277 = vector.extract_strided_slice %276 {offsets = [0, 0], sizes = [8, 32], strides = [1, 1]} : vector<8x160xf32> to vector<8x32xf32>
    %278 = vector.extract_strided_slice %276 {offsets = [0, 32], sizes = [8, 32], strides = [1, 1]} : vector<8x160xf32> to vector<8x32xf32>
    %279 = vector.extract_strided_slice %276 {offsets = [0, 64], sizes = [8, 32], strides = [1, 1]} : vector<8x160xf32> to vector<8x32xf32>
    %280 = vector.extract_strided_slice %276 {offsets = [0, 96], sizes = [8, 32], strides = [1, 1]} : vector<8x160xf32> to vector<8x32xf32>
    %281 = vector.extract_strided_slice %276 {offsets = [0, 128], sizes = [8, 32], strides = [1, 1]} : vector<8x160xf32> to vector<8x32xf32>
    %282 = vector.extract_strided_slice %270 {offsets = [0, 160], sizes = [8, 32], strides = [1, 1]} : vector<8x224xf32> to vector<8x32xf32>
    %283 = math.tanh %282 : vector<8x32xf32>
    %284 = vector.extract_strided_slice %270 {offsets = [0, 192], sizes = [8, 32], strides = [1, 1]} : vector<8x224xf32> to vector<8x32xf32>
    %cst_55 = arith.constant 0.000000e+00 : f32
    %285 = vector.broadcast %cst_55 : f32 to vector<8x32xf32>
    %286 = arith.maximumf %284, %285 : vector<8x32xf32>
    %287 = vector.broadcast %cst_55 : f32 to vector<8x32xf32>
    %288 = arith.subf %284, %287 : vector<8x32xf32>
    %289 = arith.cmpf one, %288, %288 : vector<8x32xf32>
    %290 = vector.broadcast %cst_55 : f32 to vector<8x32xf32>
    %291 = arith.addf %284, %290 : vector<8x32xf32>
    %292 = math.absf %288 : vector<8x32xf32>
    %cst_56 = arith.constant 0.000000e+00 : f32
    %293 = vector.broadcast %cst_56 : f32 to vector<8x32xf32>
    %294 = arith.subf %293, %292 : vector<8x32xf32>
    %295 = math.exp %294 : vector<8x32xf32>
    %296 = math.log1p %295 : vector<8x32xf32>
    %297 = arith.addf %286, %296 : vector<8x32xf32>
    %298 = arith.select %289, %291, %297 : vector<8x32xi1>, vector<8x32xf32>
    %299 = arith.mulf %278, %263 : vector<8x32xf32>
    %300 = arith.mulf %277, %283 : vector<8x32xf32>
    %301 = arith.addf %299, %300 : vector<8x32xf32>
    %302 = arith.mulf %281, %251 : vector<8x32xf32>
    %303 = arith.mulf %280, %283 : vector<8x32xf32>
    %304 = arith.addf %302, %303 : vector<8x32xf32>
    %305 = tpu.concatenate %279, %301, %304, %298 in 1 : vector<8x32xf32>, vector<8x32xf32>, vector<8x32xf32>, vector<8x32xf32> -> vector<8x128xf32>
    %306 = arith.index_cast %c4_i32 : i32 to index
    %c0_57 = arith.constant 0 : index
    %c0_58 = arith.constant 0 : index
    %307 = vector.load %arg5[%306, %c0_57, %c0_58] : memref<8x8x128xf32, #tpu.memory_space<vmem>>, vector<1x8x128xf32>
    %308 = vector.shape_cast %307 : vector<1x8x128xf32> to vector<8x128xf32>
    %309 = vector.shape_cast %305 : vector<8x128xf32> to vector<1x8x128xf32>
    tpu.vector_store %arg5[%306, %c0_57, %c0_58], %309 {strides = array<i32>} : memref<8x8x128xf32, #tpu.memory_space<vmem>>, vector<1x8x128xf32>,
    %c5_i32 = arith.constant 5 : i32
    %310 = vector.extract_strided_slice %305 {offsets = [0, 0], sizes = [8, 32], strides = [1, 1]} : vector<8x128xf32> to vector<8x32xf32>
    %311 = vector.extract_strided_slice %305 {offsets = [0, 32], sizes = [8, 32], strides = [1, 1]} : vector<8x128xf32> to vector<8x32xf32>
    %312 = vector.extract_strided_slice %305 {offsets = [0, 64], sizes = [8, 32], strides = [1, 1]} : vector<8x128xf32> to vector<8x32xf32>
    %313 = vector.extract_strided_slice %305 {offsets = [0, 96], sizes = [8, 32], strides = [1, 1]} : vector<8x128xf32> to vector<8x32xf32>
    %314 = arith.index_cast %c5_i32 : i32 to index
    %c0_59 = arith.constant 0 : index
    %c0_60 = arith.constant 0 : index
    %315 = vector.load %arg2[%314, %c0_59, %c0_60] : memref<8x8x1xf32, #tpu.memory_space<vmem>>, vector<1x8x1xf32>
    %316 = vector.shape_cast %315 : vector<1x8x1xf32> to vector<8x1xf32>
    %317 = arith.subf %311, %312 : vector<8x32xf32>
    %cst_61 = arith.constant 0.000000e+00 : f32
    %318 = vector.broadcast %cst_61 : f32 to vector<8x32xf32>
    %319 = arith.subf %318, %313 : vector<8x32xf32>
    %320 = vector.broadcast %316 : vector<8x1xf32> to vector<8x32xf32>
    %321 = arith.mulf %319, %320 : vector<8x32xf32>
    %322 = math.exp %321 : vector<8x32xf32>
    %323 = arith.mulf %317, %322 : vector<8x32xf32>
    %324 = arith.addf %312, %323 : vector<8x32xf32>
    %325 = math.tanh %324 : vector<8x32xf32>
    %326 = arith.mulf %310, %325 : vector<8x32xf32>
    %327 = arith.index_cast %c5_i32 : i32 to index
    %c0_62 = arith.constant 0 : index
    %c0_63 = arith.constant 0 : index
    %328 = vector.load %arg1[%327, %c0_62, %c0_63] : memref<8x8x224xf32, #tpu.memory_space<vmem>>, vector<1x8x224xf32>
    %329 = vector.shape_cast %328 : vector<1x8x224xf32> to vector<8x224xf32>
    %cst_64 = arith.constant dense<0.000000e+00> : vector<8x224xf32>
    %330 = tpu.matmul %326, %3, %cst_64 {dimension_numbers = #tpu.dot_dimension_numbers<[1], [0], [0], [1], [0, 0, 1, 1], [], []>} : vector<8x32xf32>, vector<32x224xf32>, vector<8x224xf32> -> vector<8x224xf32>
    %331 = arith.addf %329, %330 : vector<8x224xf32>
    %332 = vector.extract_strided_slice %331 {offsets = [0, 0], sizes = [8, 160], strides = [1, 1]} : vector<8x224xf32> to vector<8x160xf32>
    %333 = arith.negf %332 : vector<8x160xf32>
    %334 = math.exp %333 : vector<8x160xf32>
    %cst_65 = arith.constant 1.000000e+00 : f32
    %335 = vector.broadcast %cst_65 : f32 to vector<8x160xf32>
    %336 = arith.addf %335, %334 : vector<8x160xf32>
    %337 = arith.divf %335, %336 : vector<8x160xf32>
    %338 = vector.extract_strided_slice %337 {offsets = [0, 0], sizes = [8, 32], strides = [1, 1]} : vector<8x160xf32> to vector<8x32xf32>
    %339 = vector.extract_strided_slice %337 {offsets = [0, 32], sizes = [8, 32], strides = [1, 1]} : vector<8x160xf32> to vector<8x32xf32>
    %340 = vector.extract_strided_slice %337 {offsets = [0, 64], sizes = [8, 32], strides = [1, 1]} : vector<8x160xf32> to vector<8x32xf32>
    %341 = vector.extract_strided_slice %337 {offsets = [0, 96], sizes = [8, 32], strides = [1, 1]} : vector<8x160xf32> to vector<8x32xf32>
    %342 = vector.extract_strided_slice %337 {offsets = [0, 128], sizes = [8, 32], strides = [1, 1]} : vector<8x160xf32> to vector<8x32xf32>
    %343 = vector.extract_strided_slice %331 {offsets = [0, 160], sizes = [8, 32], strides = [1, 1]} : vector<8x224xf32> to vector<8x32xf32>
    %344 = math.tanh %343 : vector<8x32xf32>
    %345 = vector.extract_strided_slice %331 {offsets = [0, 192], sizes = [8, 32], strides = [1, 1]} : vector<8x224xf32> to vector<8x32xf32>
    %cst_66 = arith.constant 0.000000e+00 : f32
    %346 = vector.broadcast %cst_66 : f32 to vector<8x32xf32>
    %347 = arith.maximumf %345, %346 : vector<8x32xf32>
    %348 = vector.broadcast %cst_66 : f32 to vector<8x32xf32>
    %349 = arith.subf %345, %348 : vector<8x32xf32>
    %350 = arith.cmpf one, %349, %349 : vector<8x32xf32>
    %351 = vector.broadcast %cst_66 : f32 to vector<8x32xf32>
    %352 = arith.addf %345, %351 : vector<8x32xf32>
    %353 = math.absf %349 : vector<8x32xf32>
    %cst_67 = arith.constant 0.000000e+00 : f32
    %354 = vector.broadcast %cst_67 : f32 to vector<8x32xf32>
    %355 = arith.subf %354, %353 : vector<8x32xf32>
    %356 = math.exp %355 : vector<8x32xf32>
    %357 = math.log1p %356 : vector<8x32xf32>
    %358 = arith.addf %347, %357 : vector<8x32xf32>
    %359 = arith.select %350, %352, %358 : vector<8x32xi1>, vector<8x32xf32>
    %360 = arith.mulf %339, %324 : vector<8x32xf32>
    %361 = arith.mulf %338, %344 : vector<8x32xf32>
    %362 = arith.addf %360, %361 : vector<8x32xf32>
    %363 = arith.mulf %342, %312 : vector<8x32xf32>
    %364 = arith.mulf %341, %344 : vector<8x32xf32>
    %365 = arith.addf %363, %364 : vector<8x32xf32>
    %366 = tpu.concatenate %340, %362, %365, %359 in 1 : vector<8x32xf32>, vector<8x32xf32>, vector<8x32xf32>, vector<8x32xf32> -> vector<8x128xf32>
    %367 = arith.index_cast %c5_i32 : i32 to index
    %c0_68 = arith.constant 0 : index
    %c0_69 = arith.constant 0 : index
    %368 = vector.load %arg5[%367, %c0_68, %c0_69] : memref<8x8x128xf32, #tpu.memory_space<vmem>>, vector<1x8x128xf32>
    %369 = vector.shape_cast %368 : vector<1x8x128xf32> to vector<8x128xf32>
    %370 = vector.shape_cast %366 : vector<8x128xf32> to vector<1x8x128xf32>
    tpu.vector_store %arg5[%367, %c0_68, %c0_69], %370 {strides = array<i32>} : memref<8x8x128xf32, #tpu.memory_space<vmem>>, vector<1x8x128xf32>,
    %c6_i32 = arith.constant 6 : i32
    %371 = vector.extract_strided_slice %366 {offsets = [0, 0], sizes = [8, 32], strides = [1, 1]} : vector<8x128xf32> to vector<8x32xf32>
    %372 = vector.extract_strided_slice %366 {offsets = [0, 32], sizes = [8, 32], strides = [1, 1]} : vector<8x128xf32> to vector<8x32xf32>
    %373 = vector.extract_strided_slice %366 {offsets = [0, 64], sizes = [8, 32], strides = [1, 1]} : vector<8x128xf32> to vector<8x32xf32>
    %374 = vector.extract_strided_slice %366 {offsets = [0, 96], sizes = [8, 32], strides = [1, 1]} : vector<8x128xf32> to vector<8x32xf32>
    %375 = arith.index_cast %c6_i32 : i32 to index
    %c0_70 = arith.constant 0 : index
    %c0_71 = arith.constant 0 : index
    %376 = vector.load %arg2[%375, %c0_70, %c0_71] : memref<8x8x1xf32, #tpu.memory_space<vmem>>, vector<1x8x1xf32>
    %377 = vector.shape_cast %376 : vector<1x8x1xf32> to vector<8x1xf32>
    %378 = arith.subf %372, %373 : vector<8x32xf32>
    %cst_72 = arith.constant 0.000000e+00 : f32
    %379 = vector.broadcast %cst_72 : f32 to vector<8x32xf32>
    %380 = arith.subf %379, %374 : vector<8x32xf32>
    %381 = vector.broadcast %377 : vector<8x1xf32> to vector<8x32xf32>
    %382 = arith.mulf %380, %381 : vector<8x32xf32>
    %383 = math.exp %382 : vector<8x32xf32>
    %384 = arith.mulf %378, %383 : vector<8x32xf32>
    %385 = arith.addf %373, %384 : vector<8x32xf32>
    %386 = math.tanh %385 : vector<8x32xf32>
    %387 = arith.mulf %371, %386 : vector<8x32xf32>
    %388 = arith.index_cast %c6_i32 : i32 to index
    %c0_73 = arith.constant 0 : index
    %c0_74 = arith.constant 0 : index
    %389 = vector.load %arg1[%388, %c0_73, %c0_74] : memref<8x8x224xf32, #tpu.memory_space<vmem>>, vector<1x8x224xf32>
    %390 = vector.shape_cast %389 : vector<1x8x224xf32> to vector<8x224xf32>
    %cst_75 = arith.constant dense<0.000000e+00> : vector<8x224xf32>
    %391 = tpu.matmul %387, %3, %cst_75 {dimension_numbers = #tpu.dot_dimension_numbers<[1], [0], [0], [1], [0, 0, 1, 1], [], []>} : vector<8x32xf32>, vector<32x224xf32>, vector<8x224xf32> -> vector<8x224xf32>
    %392 = arith.addf %390, %391 : vector<8x224xf32>
    %393 = vector.extract_strided_slice %392 {offsets = [0, 0], sizes = [8, 160], strides = [1, 1]} : vector<8x224xf32> to vector<8x160xf32>
    %394 = arith.negf %393 : vector<8x160xf32>
    %395 = math.exp %394 : vector<8x160xf32>
    %cst_76 = arith.constant 1.000000e+00 : f32
    %396 = vector.broadcast %cst_76 : f32 to vector<8x160xf32>
    %397 = arith.addf %396, %395 : vector<8x160xf32>
    %398 = arith.divf %396, %397 : vector<8x160xf32>
    %399 = vector.extract_strided_slice %398 {offsets = [0, 0], sizes = [8, 32], strides = [1, 1]} : vector<8x160xf32> to vector<8x32xf32>
    %400 = vector.extract_strided_slice %398 {offsets = [0, 32], sizes = [8, 32], strides = [1, 1]} : vector<8x160xf32> to vector<8x32xf32>
    %401 = vector.extract_strided_slice %398 {offsets = [0, 64], sizes = [8, 32], strides = [1, 1]} : vector<8x160xf32> to vector<8x32xf32>
    %402 = vector.extract_strided_slice %398 {offsets = [0, 96], sizes = [8, 32], strides = [1, 1]} : vector<8x160xf32> to vector<8x32xf32>
    %403 = vector.extract_strided_slice %398 {offsets = [0, 128], sizes = [8, 32], strides = [1, 1]} : vector<8x160xf32> to vector<8x32xf32>
    %404 = vector.extract_strided_slice %392 {offsets = [0, 160], sizes = [8, 32], strides = [1, 1]} : vector<8x224xf32> to vector<8x32xf32>
    %405 = math.tanh %404 : vector<8x32xf32>
    %406 = vector.extract_strided_slice %392 {offsets = [0, 192], sizes = [8, 32], strides = [1, 1]} : vector<8x224xf32> to vector<8x32xf32>
    %cst_77 = arith.constant 0.000000e+00 : f32
    %407 = vector.broadcast %cst_77 : f32 to vector<8x32xf32>
    %408 = arith.maximumf %406, %407 : vector<8x32xf32>
    %409 = vector.broadcast %cst_77 : f32 to vector<8x32xf32>
    %410 = arith.subf %406, %409 : vector<8x32xf32>
    %411 = arith.cmpf one, %410, %410 : vector<8x32xf32>
    %412 = vector.broadcast %cst_77 : f32 to vector<8x32xf32>
    %413 = arith.addf %406, %412 : vector<8x32xf32>
    %414 = math.absf %410 : vector<8x32xf32>
    %cst_78 = arith.constant 0.000000e+00 : f32
    %415 = vector.broadcast %cst_78 : f32 to vector<8x32xf32>
    %416 = arith.subf %415, %414 : vector<8x32xf32>
    %417 = math.exp %416 : vector<8x32xf32>
    %418 = math.log1p %417 : vector<8x32xf32>
    %419 = arith.addf %408, %418 : vector<8x32xf32>
    %420 = arith.select %411, %413, %419 : vector<8x32xi1>, vector<8x32xf32>
    %421 = arith.mulf %400, %385 : vector<8x32xf32>
    %422 = arith.mulf %399, %405 : vector<8x32xf32>
    %423 = arith.addf %421, %422 : vector<8x32xf32>
    %424 = arith.mulf %403, %373 : vector<8x32xf32>
    %425 = arith.mulf %402, %405 : vector<8x32xf32>
    %426 = arith.addf %424, %425 : vector<8x32xf32>
    %427 = tpu.concatenate %401, %423, %426, %420 in 1 : vector<8x32xf32>, vector<8x32xf32>, vector<8x32xf32>, vector<8x32xf32> -> vector<8x128xf32>
    %428 = arith.index_cast %c6_i32 : i32 to index
    %c0_79 = arith.constant 0 : index
    %c0_80 = arith.constant 0 : index
    %429 = vector.load %arg5[%428, %c0_79, %c0_80] : memref<8x8x128xf32, #tpu.memory_space<vmem>>, vector<1x8x128xf32>
    %430 = vector.shape_cast %429 : vector<1x8x128xf32> to vector<8x128xf32>
    %431 = vector.shape_cast %427 : vector<8x128xf32> to vector<1x8x128xf32>
    tpu.vector_store %arg5[%428, %c0_79, %c0_80], %431 {strides = array<i32>} : memref<8x8x128xf32, #tpu.memory_space<vmem>>, vector<1x8x128xf32>,
    %c7_i32 = arith.constant 7 : i32
    %432 = vector.extract_strided_slice %427 {offsets = [0, 0], sizes = [8, 32], strides = [1, 1]} : vector<8x128xf32> to vector<8x32xf32>
    %433 = vector.extract_strided_slice %427 {offsets = [0, 32], sizes = [8, 32], strides = [1, 1]} : vector<8x128xf32> to vector<8x32xf32>
    %434 = vector.extract_strided_slice %427 {offsets = [0, 64], sizes = [8, 32], strides = [1, 1]} : vector<8x128xf32> to vector<8x32xf32>
    %435 = vector.extract_strided_slice %427 {offsets = [0, 96], sizes = [8, 32], strides = [1, 1]} : vector<8x128xf32> to vector<8x32xf32>
    %436 = arith.index_cast %c7_i32 : i32 to index
    %c0_81 = arith.constant 0 : index
    %c0_82 = arith.constant 0 : index
    %437 = vector.load %arg2[%436, %c0_81, %c0_82] : memref<8x8x1xf32, #tpu.memory_space<vmem>>, vector<1x8x1xf32>
    %438 = vector.shape_cast %437 : vector<1x8x1xf32> to vector<8x1xf32>
    %439 = arith.subf %433, %434 : vector<8x32xf32>
    %cst_83 = arith.constant 0.000000e+00 : f32
    %440 = vector.broadcast %cst_83 : f32 to vector<8x32xf32>
    %441 = arith.subf %440, %435 : vector<8x32xf32>
    %442 = vector.broadcast %438 : vector<8x1xf32> to vector<8x32xf32>
    %443 = arith.mulf %441, %442 : vector<8x32xf32>
    %444 = math.exp %443 : vector<8x32xf32>
    %445 = arith.mulf %439, %444 : vector<8x32xf32>
    %446 = arith.addf %434, %445 : vector<8x32xf32>
    %447 = math.tanh %446 : vector<8x32xf32>
    %448 = arith.mulf %432, %447 : vector<8x32xf32>
    %449 = arith.index_cast %c7_i32 : i32 to index
    %c0_84 = arith.constant 0 : index
    %c0_85 = arith.constant 0 : index
    %450 = vector.load %arg1[%449, %c0_84, %c0_85] : memref<8x8x224xf32, #tpu.memory_space<vmem>>, vector<1x8x224xf32>
    %451 = vector.shape_cast %450 : vector<1x8x224xf32> to vector<8x224xf32>
    %cst_86 = arith.constant dense<0.000000e+00> : vector<8x224xf32>
    %452 = tpu.matmul %448, %3, %cst_86 {dimension_numbers = #tpu.dot_dimension_numbers<[1], [0], [0], [1], [0, 0, 1, 1], [], []>} : vector<8x32xf32>, vector<32x224xf32>, vector<8x224xf32> -> vector<8x224xf32>
    %453 = arith.addf %451, %452 : vector<8x224xf32>
    %454 = vector.extract_strided_slice %453 {offsets = [0, 0], sizes = [8, 160], strides = [1, 1]} : vector<8x224xf32> to vector<8x160xf32>
    %455 = arith.negf %454 : vector<8x160xf32>
    %456 = math.exp %455 : vector<8x160xf32>
    %cst_87 = arith.constant 1.000000e+00 : f32
    %457 = vector.broadcast %cst_87 : f32 to vector<8x160xf32>
    %458 = arith.addf %457, %456 : vector<8x160xf32>
    %459 = arith.divf %457, %458 : vector<8x160xf32>
    %460 = vector.extract_strided_slice %459 {offsets = [0, 0], sizes = [8, 32], strides = [1, 1]} : vector<8x160xf32> to vector<8x32xf32>
    %461 = vector.extract_strided_slice %459 {offsets = [0, 32], sizes = [8, 32], strides = [1, 1]} : vector<8x160xf32> to vector<8x32xf32>
    %462 = vector.extract_strided_slice %459 {offsets = [0, 64], sizes = [8, 32], strides = [1, 1]} : vector<8x160xf32> to vector<8x32xf32>
    %463 = vector.extract_strided_slice %459 {offsets = [0, 96], sizes = [8, 32], strides = [1, 1]} : vector<8x160xf32> to vector<8x32xf32>
    %464 = vector.extract_strided_slice %459 {offsets = [0, 128], sizes = [8, 32], strides = [1, 1]} : vector<8x160xf32> to vector<8x32xf32>
    %465 = vector.extract_strided_slice %453 {offsets = [0, 160], sizes = [8, 32], strides = [1, 1]} : vector<8x224xf32> to vector<8x32xf32>
    %466 = math.tanh %465 : vector<8x32xf32>
    %467 = vector.extract_strided_slice %453 {offsets = [0, 192], sizes = [8, 32], strides = [1, 1]} : vector<8x224xf32> to vector<8x32xf32>
    %cst_88 = arith.constant 0.000000e+00 : f32
    %468 = vector.broadcast %cst_88 : f32 to vector<8x32xf32>
    %469 = arith.maximumf %467, %468 : vector<8x32xf32>
    %470 = vector.broadcast %cst_88 : f32 to vector<8x32xf32>
    %471 = arith.subf %467, %470 : vector<8x32xf32>
    %472 = arith.cmpf one, %471, %471 : vector<8x32xf32>
    %473 = vector.broadcast %cst_88 : f32 to vector<8x32xf32>
    %474 = arith.addf %467, %473 : vector<8x32xf32>
    %475 = math.absf %471 : vector<8x32xf32>
    %cst_89 = arith.constant 0.000000e+00 : f32
    %476 = vector.broadcast %cst_89 : f32 to vector<8x32xf32>
    %477 = arith.subf %476, %475 : vector<8x32xf32>
    %478 = math.exp %477 : vector<8x32xf32>
    %479 = math.log1p %478 : vector<8x32xf32>
    %480 = arith.addf %469, %479 : vector<8x32xf32>
    %481 = arith.select %472, %474, %480 : vector<8x32xi1>, vector<8x32xf32>
    %482 = arith.mulf %461, %446 : vector<8x32xf32>
    %483 = arith.mulf %460, %466 : vector<8x32xf32>
    %484 = arith.addf %482, %483 : vector<8x32xf32>
    %485 = arith.mulf %464, %434 : vector<8x32xf32>
    %486 = arith.mulf %463, %466 : vector<8x32xf32>
    %487 = arith.addf %485, %486 : vector<8x32xf32>
    %488 = tpu.concatenate %462, %484, %487, %481 in 1 : vector<8x32xf32>, vector<8x32xf32>, vector<8x32xf32>, vector<8x32xf32> -> vector<8x128xf32>
    %489 = arith.index_cast %c7_i32 : i32 to index
    %c0_90 = arith.constant 0 : index
    %c0_91 = arith.constant 0 : index
    %490 = vector.load %arg5[%489, %c0_90, %c0_91] : memref<8x8x128xf32, #tpu.memory_space<vmem>>, vector<1x8x128xf32>
    %491 = vector.shape_cast %490 : vector<1x8x128xf32> to vector<8x128xf32>
    %492 = vector.shape_cast %488 : vector<8x128xf32> to vector<1x8x128xf32>
    tpu.vector_store %arg5[%489, %c0_90, %c0_91], %492 {strides = array<i32>} : memref<8x8x128xf32, #tpu.memory_space<vmem>>, vector<1x8x128xf32>,
    %c8_i32 = arith.constant 8 : i32
    %c0_92 = arith.constant 0 : index
    %c0_93 = arith.constant 0 : index
    %493 = vector.load %arg6[%c0_92, %c0_93] : memref<8x128xf32, #tpu.memory_space<vmem>>, vector<8x128xf32>
    tpu.vector_store %arg6[%c0_92, %c0_93], %488 {strides = array<i32>} : memref<8x128xf32, #tpu.memory_space<vmem>>, vector<8x128xf32>,
    return
  }
  func.func @transform_0(%arg0: i32) -> (i32, i32, i32) {
    %c0_i32 = arith.constant 0 : i32
    %c0_i32_0 = arith.constant 0 : i32
    %c0_i32_1 = arith.constant 0 : i32
    return %arg0, %c0_i32, %c0_i32_0 : i32, i32, i32
  }
  func.func @transform_1(%arg0: i32) -> (i32, i32, i32) {
    %c0_i32 = arith.constant 0 : i32
    %c0_i32_0 = arith.constant 0 : i32
    %c0_i32_1 = arith.constant 0 : i32
    return %arg0, %c0_i32, %c0_i32_0 : i32, i32, i32
  }
  func.func @transform_2(%arg0: i32) -> (i32, i32) {
    %c0_i32 = arith.constant 0 : i32
    %c0_i32_0 = arith.constant 0 : i32
    %c0_i32_1 = arith.constant 0 : i32
    return %c0_i32, %c0_i32_0 : i32, i32
  }
  func.func @transform_3(%arg0: i32) -> (i32, i32) {
    %c0_i32 = arith.constant 0 : i32
    %c0_i32_0 = arith.constant 0 : i32
    %c0_i32_1 = arith.constant 0 : i32
    return %c0_i32, %c0_i32_0 : i32, i32
  }
  func.func @transform_4(%arg0: i32) -> (i32, i32, i32) {
    %c0_i32 = arith.constant 0 : i32
    %c0_i32_0 = arith.constant 0 : i32
    %c0_i32_1 = arith.constant 0 : i32
    return %arg0, %c0_i32, %c0_i32_0 : i32, i32, i32
  }
}

</mosaic_0001>

<bundles_post_ra>
// kernel: tpu_custom_call.1
= control target key start
LH: loop header
LB: loop body
LE: loop exit
PB: predicated region body
PF: predicated region fallthrough
CT: control target
= control target key end

     0   :  { %9 = vsyncpa [#allocation4], 0  ;;  %s2660_s0 = inlined_call_operand.hbm [shape: f32[16,8,224], index: 0, kind: input, shape index: {}]   ;;  %s2661_s1 = inlined_call_operand.vmem [shape: f32[16,8,1], index: 1, kind: input, shape index: {}]   ;;  %s2662_s2 = inlined_call_operand.vmem [shape: f32[8,128], index: 2, kind: input, shape index: {}]   ;;  %s2663_s3 = inlined_call_operand.vmem [shape: f32[32,224], index: 3, kind: input, shape index: {}]   ;;  %s2664_s4 = inlined_call_operand.hbm [shape: f32[16,8,128], index: 4, kind: output, shape index: {}]  }
   0x1   :  { %11 = vsyncpa [#allocation4 + $0x1], 0 }
   0x2   :  { %12 = vsyncpa [#allocation5], 0 }
   0x3   :  { %14 = vsyncpa [#allocation5 + $0x1], 0  ;;  %s2229_s15 = smov 0   ;;  %s2231_s16 = smov 0  }
   0x4   :  { %s2233_s17 = smov 0   ;;  %s2235_s18 = smov 0  }
   0x5 LB: > { %s2250_s19 = sadd.s32 4294967295, %s2194_s18   ;;  %s1816_s20 = sadd.s32 4294967294, %s2194_s18   ;;  %s2194_s18 = sphi %s2235_s18, %s2674_s18   ;;  %s2190_s17 = sphi %s2233_s17, %s2673_s17   ;;  %s2186_s16 = sphi %s2231_s16, %s2672_s16   ;;  %s2182_s15 = sphi %s2229_s15, %s2671_s15  }
   0x6   : > { %s2254_s21 = sadd.s32 1, %s2194_s18   ;;  %s27_s22 = sadd.s32 1, %s2190_s17 }
   0x7   : > { %s24_s23 = ssub.s32 %s2194_s18, %s2254_s21  ;;  %p34_p0 = scmp.ne.s32.totalorder %s2190_s17, %s2186_s16 }
   0x8   : > { %p25_p1 = scmp.eq.s32.totalorder %s24_s23, 0  ;;  %p35_p2 = scmp.eq.s32.totalorder %s2194_s18, 0 }
   0x9   : > { %p40_p3 = scmp.ne.s32.totalorder %s2186_s16, %s2182_s15  ;;  %p41_p4 = scmp.eq.s32.totalorder %s2250_s19, 0 }
   0xa   : > { %s2266_s24 = scalar_select %p25_p1, %s2190_s17, %s27_s22  }
   0xb   : > { %p2268_p5 = por %p35_p2, %p34_p0  ;;  %p2272_p6 = por %p41_p4, %p40_p3 }
   0xc   : > { %p132_p7 = scmp.eq.s32.totalorder %s2250_s19, 1  ;;  %p138_p8 = scmp.eq.s32.totalorder %s1816_s20, 1 }
   0xd   : > { %p1909_p10 = scmp.lt.s32.totalorder %s2194_s18, 2  ;;  %s164_s29 = sand.u32 1, %s2190_s17  }
   0xe   : > { %p2279_p11 = por %p132_p7, %p34_p0  ;;  %p2283_p12 = por %p138_p8, %p40_p3 }
   0xf   : > { %s1895_s30 = sshll.u32 %s2194_s18, 7  ;;  %s1819_s5 = sshll.u32 %s164_s29, 7 }
  0x10   : > { %s174_s8 = scalar_lea.hbm %s2660_s0, %s1895_s30  ;;  %s168_s10 = scalar_lea.vmem [#allocation3], %s1819_s5 }
  0x11   : > { %s175_s9 = sshll.u32 %s174_s8, 4  ;;  %s177_s11 = sshll.u32 %s168_s10, 4  ;;  %s176_s9 = int_to_ptr.hbm [resolvable:$true] %s175_s9  ;;  %s178_s11 = int_to_ptr.vmem [resolvable:$true] %s177_s11 }
  0x12   : > { %p2294_p13 = pnand %p1909_p10, %p2268_p5  ;;  %p1823_p0 = scmp.ge.s32.totalorder %s2194_s18, 1 }
  0x13   : > { %p194_p1 = scmp.lt.s32.totalorder %s2194_s18, 3  ;;  %s165_s13 = scalar_lea.sflag [#allocation4], %s164_s29 }
  0x14   : > { %s2098_s14 = sshra.s32 %s176_s9, 4  ;;  %p2102_p3 = pneg %p2294_p13  ;;  %s2099_s14 = int_to_ptr.hbm [resolvable:$true] %s2098_s14 }
  0x15   : > { %s2100_s20 = scalar_lea.hbm %s2099_s14, 128  ;;  %s2105_s25 = scalar_lea.hbm %s2660_s0, 256 }
  0x16   : > { %p2101_p2 = scmp.ne.s32.totalorder %s2099_s14, %s2100_s20  ;;  %p2106_p5 = scmp.lt.s32.totalorder %s2099_s14, %s2660_s0 }
  0x17   : > { %p2107_p8 = scmp.lt.s32.totalorder %s2105_s25, %s2100_s20 }
  0x18   : > { %p2103_p4 = pnand %p2102_p3, %p2101_p2 }
  0x19   : > { %p2108_p10 = por %p2107_p8, %p2106_p5 }
  0x1a   : > { %p2104_p7 = pneg %p2103_p4 }
  0x1c   : > { %p2109_p9 = pnand %p2108_p10, %p2104_p7 }
  0x1e   : > { %2112 = shalt.err (!%p2109_p9)
}
  0x1f   : > { %s2196_s29 = smov 256   ;;  %s2197_s6 = smov 16  }
  0x20   : > { %1904 = dma.hbm_to_vmem [thread:$0]  (!%p2294_p13), %s176_s9, 2048, %s178_s11, %s165_s13, %s2196_s29, %s2196_s29, %s2197_s6  }
  0x21   : > { %p195_p2 = pnand %p1823_p0, %p194_p1 }
  0x22   : > { %s2315_s7 = sand.u32 (!%p195_p2), 1, %s2186_s16  }
  0x23   : > { %198 = sbr.rel (%p195_p2) target bundleno = 6670 (0x1a0e), region = 36  ;;  %s1824_s8 = sshll.u32 (!%p195_p2), %s2315_s7, 7 }
  0x24   : > { %s201_s10 = scalar_lea.sflag (!%p195_p2), [#allocation4], %s2315_s7  ;;  %s2319_s14 = scalar_lea.vmem (!%p195_p2), [#allocation3], %s1824_s8 }
  0x28   : > { %2173 = dma.done.wait (%p2272_p6), %s201_s10, 2048  }
  0x29   : > { %2175 = vsyncadd (%p2272_p6), %s201_s10, 4294965248  ;;  %s1825_s9 = sshll.u32 %s2315_s7, 6  ;;  %s1826_s11 = sshll.u32 %s2250_s19, 3 }
  0x2a   : > { %p237_p9 = scmp.lt.s32.totalorder %s1826_s11, 15  ;;  %s2332_s23 = scalar_lea.vmem [#allocation6], %s1825_s9 }
  0x2b   : > { %p1828_p13 = scmp.ne.s32.totalorder %s2250_s19, 0 }
  0x2c   : > { %s2676_s11 = smov (!%p237_p9, %s1826_s11), 15 }
  0x2d   : > { %s1827_s12 = sshll.u32 %s2676_s11, 3  ;;  %246 = sbr.rel (%p1828_p13) target bundleno = 52 (0x34), region = 44 }
  0x2e   : > { %s2330_s22 = scalar_lea.vmem %s2661_s1, %s1827_s12 }
  0x32   : > { %v247_v0 = vld [vmem:[%s2662_s2] sm:$0xff] }
  0x33   : > { %248 = vst [vmem:[#allocation2] sm:$0xff] %v247_v0 }
  0x34 PF: > { %v258_v1 = vld [vmem:[%s2330_s22] sm:$0xff]  ;;  %v2198_v2 = vmov 0   ;;  %s2199_s30 = smov 96   ;;  %s2200_s5 = smov 64   ;;  %v2352_v13 = vld [vmem:[%s2663_s3 + $0x30] sm:$0xff]  ;;  %v2357_v14 = vld [vmem:[%s2663_s3 + $0x38] sm:$0xff] }
  0x35   : > { %1951 = vset.pattern.permute.xlu0 %v2198_v2  ;;  %1952 = vset.pattern.permute.xlu2 %v2198_v2  ;;  %s2201_s29 = smov 32   ;;  %v2362_v15 = vld [vmem:[%s2663_s3 + $0x20] sm:$0xff]  ;;  %v2369_v16 = vld [vmem:[%s2663_s3 + $0x28] sm:$0xff]  ;;  %v2382_v20 = vld [vmem:[%s2663_s3 + $0x10] sm:$0xff]  ;;  %vm291_vm0 = vcmask 261120   ;;  %vm435_vm11 = vcmask 523264  }
  0x36   : > { %267 = vperm.xlu0 %1951, %v258_v1   ;;  %1953 = vset.pattern.permute.xlu1 %v2198_v2  ;;  %v2387_v21 = vld [vmem:[%s2663_s3 + $0x18] sm:$0xff]  ;;  %v2394_v22 = vld [vmem:[%s2663_s3] sm:$0xff]  ;;  %v2399_v23 = vld [vmem:[%s2663_s3 + $0x8] sm:$0xff]  ;;  %vm437_vm12 = vcmask 785408   ;;  %s1728_s13 = sshll.u32 %s2332_s23, 4  ;;  %s2148_s8 = scalar_lea.hbm %s2664_s4, 128  ;;  %s1729_s13 = int_to_ptr.vmem [resolvable:$true] %s1728_s13 }
  0x37   : > { %307 = vmatpush.msra.mxu0 %v2352_v13  ;;  %327 = vmatpush.msra.mxu1 %v2357_v14  ;;  %v290_v26 = vld [vmem:[%s2319_s14 + $0x8] sm:$0xff]  ;;  %v289_v30 = vld [vmem:[%s2319_s14] sm:$0xff] }
  0x38   : > { %490 = vmatpush.msra.mxu2 %v2352_v13  ;;  %510 = vmatpush.msra.mxu3 %v2357_v14 }
  0x39   : > { %308 = vmatpush.msra.mxu0 %v2362_v15  ;;  %328 = vmatpush.msra.mxu1 %v2369_v16 }
  0x3a   : > { %v2339_v3 = vld [vmem:[#allocation2] sm:$0xff]  ;;  %491 = vmatpush.msra.mxu2 %v2362_v15  ;;  %511 = vmatpush.msra.mxu3 %v2369_v16 }
  0x3b   : > { %v264_v4 = vsub.f32 0.0, %v2339_v3  ;;  %309 = vmatpush.msra.mxu0 %v2382_v20  ;;  %329 = vmatpush.msra.mxu1 %v2387_v21 }
  0x3c   : > { %492 = vmatpush.msra.mxu2 %v2382_v20  ;;  %512 = vmatpush.msra.mxu3 %v2387_v21 }
  0x3d   : > { %310 = vmatpush.msra.mxu0 %v2394_v22  ;;  %330 = vmatpush.msra.mxu1 %v2399_v23 }
  0x3e   : > { %260 = vrot.lane.b32.xlu0 %v2339_v3, %s2199_s30  ;;  %493 = vmatpush.msra.mxu2 %v2394_v22 }
  0x3f   : > { %513 = vmatpush.msra.mxu3 %v2399_v23  ;;  %692 = vmatpush.msrb.mxu1 %v2357_v14 }
  0x40   : > { %672 = vmatpush.msrb.mxu0 %v2352_v13  ;;  %854 = vmatpush.msrb.mxu2 %v2352_v13 }
  0x41   : > { %874 = vmatpush.msrb.mxu3 %v2357_v14  ;;  %693 = vmatpush.msrb.mxu1 %v2369_v16 }
  0x42   : > { %673 = vmatpush.msrb.mxu0 %v2362_v15  ;;  %855 = vmatpush.msrb.mxu2 %v2362_v15 }
  0x43   : > { %875 = vmatpush.msrb.mxu3 %v2369_v16  ;;  %694 = vmatpush.msrb.mxu1 %v2387_v21 }
  0x44   : > { %674 = vmatpush.msrb.mxu0 %v2382_v20  ;;  %856 = vmatpush.msrb.mxu2 %v2382_v20 }
  0x45   : > { %876 = vmatpush.msrb.mxu3 %v2387_v21  ;;  %695 = vmatpush.msrb.mxu1 %v2399_v23 }
  0x46   : > { %675 = vmatpush.msrb.mxu0 %v2394_v22  ;;  %857 = vmatpush.msrb.mxu2 %v2394_v22 }
  0x47   : > { %877 = vmatpush.msrb.mxu3 %v2399_v23 }
  0xa8   : > { %v268_v5 = vpop.permute.xlu0 %267 }
  0xa9   : > { %v270_v6 = vmul.f32 %v268_v5, %v264_v4  ;;  %v1833_v5 = vld [vmem:[%s2330_s22 + $0x8] sm:$0xff] }
  0xab   : > { %v271_v7 = vmul.f32 1.442695, %v270_v6 }
  0xad   : > { %1954 = vpow2.f32 %v271_v7 }
  0xb0   : > { %v261_v9 = vpop.permute.xlu0 %260 }
  0xb1   : > { %v263_v10 = vsub.f32 %v2339_v3, %v261_v9 }
  0xb3   : > { %v1955_v8 = vpop.eup %1954 }
  0xb4   : > { %274 = vrot.lane.b32.xlu1 %v1955_v8, %s2200_s5 }
 0x126   : > { %v275_v11 = vpop.permute.xlu1 %274 }
 0x127   : > { %v277_v12 = vmul.f32 %v275_v11, %v263_v10 }
 0x129   : > { %279 = vrot.lane.b32.xlu1 %v277_v12, %s2201_s29 }
 0x131   : > { %409 = vrot.lane.b32.xlu1 %v2339_v3, %s2200_s5 }
 0x19b   : > { %v280_v17 = vpop.permute.xlu1 %279 }
 0x19c   : > { %v282_v18 = vadd.f32 %v280_v17, %v2339_v3 }
 0x19e   : > { %1956 = vtanh.f32 %v282_v18 }
 0x1a4   : > { %v1957_v19 = vpop.eup %1956 }
 0x1a5   : > { %285 = vrot.lane.b32.xlu2 %v1957_v19, %s2200_s5 }
 0x1ff   : > { %v286_v24 = vpop.permute.xlu2 %285 }
 0x200   : > { %v288_v25 = vmul.f32 %v286_v24, %v2339_v3 }
 0x202   : > { %1829 = vmatmul.msk.f32.vlgmr.msra.gmra.mxu0 %vm291_vm0, %v288_v25  ;;  %1830 = vmatmul.msk.f32.vlgmr.msra.gmra.mxu1 %vm291_vm0, %v288_v25 }
 0x203   : > { %1056 = vmatpush.msra.mxu1 %v2357_v14  ;;  %1036 = vmatpush.msra.mxu0 %v2352_v13 }
 0x205   : > { %1057 = vmatpush.msra.mxu1 %v2369_v16  ;;  %1037 = vmatpush.msra.mxu0 %v2362_v15 }
 0x207   : > { %1058 = vmatpush.msra.mxu1 %v2387_v21  ;;  %1038 = vmatpush.msra.mxu0 %v2382_v20 }
 0x209   : > { %1059 = vmatpush.msra.mxu1 %v2399_v23  ;;  %1039 = vmatpush.msra.mxu0 %v2394_v22 }
 0x27f   : > { %v332_v27 = vpop.f32.mrf.mxu1  ;;  %v312_v31 = vpop.f32.mrf.mxu0 }
 0x280   : > { %v336_v28 = vadd.f32 %v332_v27, %v290_v26  ;;  %v335_v32 = vadd.f32 %v312_v31, %v289_v30 }
 0x282   : > { %1958 = vtanh.f32 %v336_v28  ;;  %v1831_v33 = vmul.f32 -1.442695, %v335_v32  ;;  %v379_v39 = vand.u32 2147483647, %v336_v28  ;;  %v376_v62 = vmax.f32 %v336_v28, 0.0 }
 0x283   : > { %vm377_vm6 = vcmp.ne.f32.partialorder %v336_v28, %v336_v28  ;;  %v1832_v1 = vmul.f32 -1.442695, %v336_v28 }
 0x284   : > { %1960 = vpow2.f32 %v1831_v33  ;;  %v380_v41 = vsub.f32 0.0, %v379_v39 }
 0x286   : > { %v381_v45 = vmul.f32 1.442695, %v380_v41 }
 0x288   : > { %v1959_v29 = vpop.eup %1958 }
 0x289   : > { %400 = vrot.lane.b32.xlu0 %v1959_v29, %s2199_s30  ;;  %413 = vrot.lane.b32.xlu2 %v1959_v29, %s2200_s5 }
 0x28a   : > { %v1961_v34 = vpop.eup %1960 }
 0x28b   : > { %v343_v35 = vadd.f32 1.0, %v1961_v34 }
 0x28d   : > { %1962 = vrcp.f32 %v343_v35  ;;  %v356_v43 = vand.u32 2147483648, %v343_v35  ;;  %vm350_vm2 = vweird.f32 %v343_v35  ;;  %v354_v44 = vand.u32 2147483647, %v343_v35 }
 0x28e   : > { %1964 = vpow2.f32 %v381_v45 }
 0x28f   : > { %v357_v47 = vor.u32 1.1754944e-38, %v356_v43  ;;  %vm355_vm4 = vcmp.eq.f32.partialorder %v354_v44, 8.507059e+37 }
 0x291   : > { %395 = vrot.lane.b32.xlu0 %v282_v18, %s2199_s30  ;;  %v410_v18 = vpop.permute.xlu1 %409 }
 0x293   : > { %v1963_v36 = vpop.eup %1962 }
 0x294   : > { %v346_v37 = vmul.f32 %v1963_v36, %v343_v35  ;;  %vm351_vm1 = vweird.f32 %v1963_v36  ;;  %v1965_v51 = vpop.eup %1964 }
 0x295   : > { %vm352_vm3 = vmor %vm350_vm2, %vm351_vm1  ;;  %v383_v52 = vadd.f32 1.0, %v1965_v51  ;;  %v386_v53 = vmul.f32 -0.5, %v1965_v51  ;;  %v389_v56 = vand.u32 2147483647, %v1965_v51 }
 0x296   : > { %v347_v38 = vsub.f32 1.0, %v346_v37 }
 0x297   : > { %1966 = vlog2.f32 %v383_v52  ;;  %v387_v55 = vadd.f32 1.0, %v386_v53  ;;  %vm390_vm5 = vcmp.lt.f32.partialorder %v389_v56, 0.0004427343 }
 0x298   : > { %v348_v40 = vmul.f32 %v1963_v36, %v347_v38  ;;  %1968 = vpow2.f32 %v1832_v1 }
 0x299   : > { %v388_v60 = vmul.f32 %v1965_v51, %v387_v55  ;;  %v1835_v51 = vld [vmem:[%s2319_s14 + $0x18] sm:$0xff]  ;;  %v1834_v55 = vld [vmem:[%s2319_s14 + $0x10] sm:$0xff] }
 0x29a   : > { %v349_v42 = vadd.f32 %v1963_v36, %v348_v40 }
 0x29c   : > { %v353_v46 = vsel %vm352_vm3, %v1963_v36, %v349_v42 }
 0x29d   : > { %v358_v49 = vsel %vm355_vm4, %v357_v47, %v353_v46  ;;  %v1967_v54 = vpop.eup %1966 }
 0x29e   : > { %v385_v57 = vmul.f32 0.6931472, %v1967_v54  ;;  %v1969_v2 = vpop.eup %1968 }
 0x29f   : > { %v344_v3 = vadd.f32 1.0, %v1969_v2 }
 0x2a0   : > { %v391_v61 = vsel %vm390_vm5, %v388_v60, %v385_v57 }
 0x2a1   : > { %v392_v63 = vadd.f32 %v391_v61, %v376_v62  ;;  %1970 = vrcp.f32 %v344_v3  ;;  %v371_v10 = vand.u32 2147483648, %v344_v3  ;;  %vm365_vm8 = vweird.f32 %v344_v3 }
 0x2a2   : > { %v369_v11 = vand.u32 2147483647, %v344_v3 }
 0x2a3   : > { %v393_v0 = vsel %vm377_vm6, %v336_v28, %v392_v63  ;;  %v372_v17 = vor.u32 1.1754944e-38, %v371_v10 }
 0x2a4   : > { %vm370_vm10 = vcmp.eq.f32.partialorder %v369_v11, 8.507059e+37 }
 0x2a7   : > { %v1971_v4 = vpop.eup %1970 }
 0x2a8   : > { %v361_v6 = vmul.f32 %v1971_v4, %v344_v3  ;;  %vm366_vm7 = vweird.f32 %v1971_v4 }
 0x2a9   : > { %vm367_vm9 = vmor %vm365_vm8, %vm366_vm7 }
 0x2aa   : > { %v362_v7 = vsub.f32 1.0, %v361_v6 }
 0x2ac   : > { %v363_v8 = vmul.f32 %v1971_v4, %v362_v7 }
 0x2ae   : > { %v364_v9 = vadd.f32 %v1971_v4, %v363_v8 }
 0x2b0   : > { %v368_v12 = vsel %vm367_vm9, %v1971_v4, %v364_v9 }
 0x2b1   : > { %v373_v19 = vsel %vm370_vm10, %v372_v17, %v368_v12 }
 0x2b2   : > { %v412_v24 = vmul.f32 %v410_v18, %v373_v19 }
 0x2e3   : > { %v414_v48 = vpop.permute.xlu2 %413 }
 0x2e4   : > { %v416_v50 = vmul.f32 %v414_v48, %v358_v49 }
 0x2e6   : > { %418 = vrot.lane.b32.xlu2 %v416_v50, %s2201_s29 }
 0x2ee   : > { %423 = vrot.lane.b32.xlu2 %v358_v49, %s2200_s5 }
 0x2f6   : > { %450 = vperm.xlu2 %1952, %v1833_v5  }
 0x2fb   : > { %v401_v58 = vpop.permute.xlu0 %400 }
 0x2fc   : > { %v403_v59 = vmul.f32 %v401_v58, %v358_v49 }
 0x2fe   : > { %405 = vrot.lane.b32.xlu1 %v403_v59, %s2201_s29 }
 0x303   : > { %v396_v27 = vpop.permute.xlu0 %395 }
 0x304   : > { %v398_v29 = vmul.f32 %v396_v27, %v358_v49 }
 0x306   : > { %431 = vrot.lane.b32.xlu1 %v393_v0, %s2201_s29 }
 0x340   : > { %v419_v25 = vpop.permute.xlu2 %418 }
 0x341   : > { %v421_v26 = vadd.f32 %v419_v25, %v412_v24 }
 0x343   : > { %427 = vrot.lane.b32.xlu0 %v421_v26, %s2200_s5 }
 0x348   : > { %v424_v30 = vpop.permute.xlu2 %423 }
 0x350   : > { %v451_v37 = vpop.permute.xlu2 %450 }
 0x370   : > { %v406_v28 = vpop.permute.xlu1 %405 }
 0x371   : > { %v408_v31 = vadd.f32 %v406_v28, %v398_v29 }
 0x373   : > { %v434_v33 = vsel %vm291_vm0, %v424_v30, %v408_v31 }
 0x378   : > { %v432_v34 = vpop.permute.xlu1 %431 }
 0x3b5   : > { %v428_v32 = vpop.permute.xlu0 %427 }
 0x3b6   : > { %v436_v35 = vsel %vm435_vm11, %v434_v33, %v428_v32 }
 0x3b7   : > { %v438_v36 = vsel %vm437_vm12, %v436_v35, %v432_v34  ;;  %v1841_v34 = vld [vmem:[%s2330_s22 + $0x10] sm:$0xff] }
 0x3b8   : > { %439 = vst [vmem:[%s2332_s23] sm:$0xff] %v438_v36  ;;  %443 = vrot.lane.b32.xlu0 %v438_v36, %s2199_s30  ;;  %v447_v38 = vsub.f32 0.0, %v438_v36 }
 0x3ba   : > { %v453_v39 = vmul.f32 %v451_v37, %v447_v38 }
 0x3bc   : > { %v454_v40 = vmul.f32 1.442695, %v453_v39 }
 0x3be   : > { %1972 = vpow2.f32 %v454_v40 }
 0x3c4   : > { %v1973_v41 = vpop.eup %1972 }
 0x3c5   : > { %457 = vrot.lane.b32.xlu1 %v1973_v41, %s2200_s5 }
 0x42a   : > { %v444_v42 = vpop.permute.xlu0 %443 }
 0x42b   : > { %v446_v43 = vsub.f32 %v438_v36, %v444_v42 }
 0x437   : > { %v458_v44 = vpop.permute.xlu1 %457 }
 0x438   : > { %v460_v45 = vmul.f32 %v458_v44, %v446_v43 }
 0x43a   : > { %462 = vrot.lane.b32.xlu2 %v460_v45, %s2201_s29 }
 0x494   : > { %v463_v46 = vpop.permute.xlu2 %462 }
 0x495   : > { %v465_v47 = vadd.f32 %v463_v46, %v438_v36 }
 0x497   : > { %1974 = vtanh.f32 %v465_v47 }
 0x49d   : > { %v1975_v48 = vpop.eup %1974 }
 0x49e   : > { %468 = vrot.lane.b32.xlu0 %v1975_v48, %s2200_s5 }
 0x4a6   : > { %592 = vrot.lane.b32.xlu0 %v438_v36, %s2200_s5 }
 0x510   : > { %v469_v49 = vpop.permute.xlu0 %468 }
 0x511   : > { %v471_v50 = vmul.f32 %v469_v49, %v438_v36 }
 0x513   : > { %1836 = vmatmul.msk.f32.vlgmr.msra.gmra.mxu2 %vm291_vm0, %v471_v50  ;;  %1837 = vmatmul.msk.f32.vlgmr.msra.gmra.mxu3 %vm291_vm0, %v471_v50 }
 0x514   : > { %1238 = vmatpush.msra.mxu3 %v2357_v14  ;;  %1218 = vmatpush.msra.mxu2 %v2352_v13 }
 0x516   : > { %1239 = vmatpush.msra.mxu3 %v2369_v16  ;;  %1219 = vmatpush.msra.mxu2 %v2362_v15 }
 0x518   : > { %1240 = vmatpush.msra.mxu3 %v2387_v21  ;;  %1220 = vmatpush.msra.mxu2 %v2382_v20  ;;  %v593_v48 = vpop.permute.xlu0 %592 }
 0x51a   : > { %1241 = vmatpush.msra.mxu3 %v2399_v23  ;;  %1221 = vmatpush.msra.mxu2 %v2394_v22 }
 0x596   : > { %v515_v52 = vpop.f32.mrf.mxu3  ;;  %v495_v56 = vpop.f32.mrf.mxu2 }
 0x597   : > { %v519_v53 = vadd.f32 %v1835_v51, %v515_v52  ;;  %v518_v57 = vadd.f32 %v1834_v55, %v495_v56 }
 0x599   : > { %1976 = vtanh.f32 %v519_v53  ;;  %v1838_v58 = vmul.f32 -1.442695, %v518_v57  ;;  %v562_v60 = vand.u32 2147483647, %v519_v53  ;;  %v559_v29 = vmax.f32 %v519_v53, 0.0 }
 0x59a   : > { %vm560_vm3 = vcmp.ne.f32.partialorder %v519_v53, %v519_v53  ;;  %v1839_v35 = vmul.f32 -1.442695, %v519_v53 }
 0x59b   : > { %1978 = vpow2.f32 %v1838_v58  ;;  %v563_v62 = vsub.f32 0.0, %v562_v60 }
 0x59d   : > { %v564_v63 = vmul.f32 1.442695, %v563_v62 }
 0x59f   : > { %v1977_v54 = vpop.eup %1976 }
 0x5a0   : > { %583 = vrot.lane.b32.xlu2 %v1977_v54, %s2199_s30  ;;  %596 = vrot.lane.b32.xlu1 %v1977_v54, %s2200_s5 }
 0x5a1   : > { %v1979_v59 = vpop.eup %1978 }
 0x5a2   : > { %v526_v61 = vadd.f32 1.0, %v1979_v59 }
 0x5a4   : > { %1980 = vrcp.f32 %v526_v61  ;;  %v539_v8 = vand.u32 2147483648, %v526_v61  ;;  %vm533_vm14 = vweird.f32 %v526_v61  ;;  %v537_v9 = vand.u32 2147483647, %v526_v61 }
 0x5a5   : > { %1982 = vpow2.f32 %v564_v63 }
 0x5a6   : > { %v540_v17 = vor.u32 1.1754944e-38, %v539_v8  ;;  %vm538_vm1 = vcmp.eq.f32.partialorder %v537_v9, 8.507059e+37 }
 0x5a8   : > { %578 = vrot.lane.b32.xlu2 %v465_v47, %s2199_s30 }
 0x5aa   : > { %v1981_v0 = vpop.eup %1980 }
 0x5ab   : > { %v529_v1 = vmul.f32 %v1981_v0, %v526_v61  ;;  %v1983_v2 = vpop.eup %1982  ;;  %vm534_vm13 = vweird.f32 %v1981_v0 }
 0x5ac   : > { %v566_v4 = vadd.f32 1.0, %v1983_v2  ;;  %v569_v7 = vmul.f32 -0.5, %v1983_v2  ;;  %vm535_vm15 = vmor %vm533_vm14, %vm534_vm13  ;;  %v572_v18 = vand.u32 2147483647, %v1983_v2 }
 0x5ad   : > { %v530_v3 = vsub.f32 1.0, %v529_v1 }
 0x5ae   : > { %1984 = vlog2.f32 %v566_v4  ;;  %v570_v12 = vadd.f32 1.0, %v569_v7  ;;  %vm573_vm2 = vcmp.lt.f32.partialorder %v572_v18, 0.0004427343 }
 0x5af   : > { %v531_v5 = vmul.f32 %v1981_v0, %v530_v3  ;;  %1986 = vpow2.f32 %v1839_v35 }
 0x5b0   : > { %v571_v27 = vmul.f32 %v1983_v2, %v570_v12  ;;  %v1843_v12 = vld [vmem:[%s2319_s14 + $0x28] sm:$0xff] }
 0x5b1   : > { %v532_v6 = vadd.f32 %v1981_v0, %v531_v5 }
 0x5b3   : > { %v536_v11 = vsel %vm535_vm15, %v1981_v0, %v532_v6 }
 0x5b4   : > { %v1985_v10 = vpop.eup %1984  ;;  %v541_v25 = vsel %vm538_vm1, %v540_v17, %v536_v11 }
 0x5b5   : > { %v568_v19 = vmul.f32 0.6931472, %v1985_v10  ;;  %v1987_v36 = vpop.eup %1986 }
 0x5b6   : > { %v527_v37 = vadd.f32 1.0, %v1987_v36 }
 0x5b7   : > { %v574_v28 = vsel %vm573_vm2, %v571_v27, %v568_v19 }
 0x5b8   : > { %v575_v30 = vadd.f32 %v574_v28, %v559_v29  ;;  %1988 = vrcp.f32 %v527_v37  ;;  %v554_v43 = vand.u32 2147483648, %v527_v37  ;;  %vm548_vm5 = vweird.f32 %v527_v37 }
 0x5b9   : > { %v552_v44 = vand.u32 2147483647, %v527_v37 }
 0x5ba   : > { %v576_v31 = vsel %vm560_vm3, %v519_v53, %v575_v30  ;;  %v555_v46 = vor.u32 1.1754944e-38, %v554_v43 }
 0x5bb   : > { %vm553_vm7 = vcmp.eq.f32.partialorder %v552_v44, 8.507059e+37 }
 0x5be   : > { %v1989_v38 = vpop.eup %1988 }
 0x5bf   : > { %v544_v39 = vmul.f32 %v1989_v38, %v527_v37  ;;  %vm549_vm4 = vweird.f32 %v1989_v38 }
 0x5c0   : > { %vm550_vm6 = vmor %vm548_vm5, %vm549_vm4 }
 0x5c1   : > { %v545_v40 = vsub.f32 1.0, %v544_v39 }
 0x5c3   : > { %v546_v41 = vmul.f32 %v1989_v38, %v545_v40 }
 0x5c5   : > { %v547_v42 = vadd.f32 %v1989_v38, %v546_v41 }
 0x5c7   : > { %v551_v45 = vsel %vm550_vm6, %v1989_v38, %v547_v42 }
 0x5c8   : > { %v556_v47 = vsel %vm553_vm7, %v555_v46, %v551_v45 }
 0x5c9   : > { %v595_v49 = vmul.f32 %v593_v48, %v556_v47 }
 0x5fa   : > { %v584_v24 = vpop.permute.xlu2 %583 }
 0x5fb   : > { %v586_v26 = vmul.f32 %v584_v24, %v541_v25  ;;  %v1842_v24 = vld [vmem:[%s2319_s14 + $0x20] sm:$0xff] }
 0x5fd   : > { %588 = vrot.lane.b32.xlu0 %v586_v26, %s2201_s29 }
 0x602   : > { %v579_v53 = vpop.permute.xlu2 %578 }
 0x603   : > { %v581_v55 = vmul.f32 %v579_v53, %v541_v25 }
 0x605   : > { %614 = vrot.lane.b32.xlu0 %v576_v31, %s2201_s29 }
 0x612   : > { %v597_v32 = vpop.permute.xlu1 %596 }
 0x613   : > { %v599_v33 = vmul.f32 %v597_v32, %v541_v25 }
 0x615   : > { %601 = vrot.lane.b32.xlu1 %v599_v33, %s2201_s29 }
 0x61d   : > { %606 = vrot.lane.b32.xlu1 %v541_v25, %s2200_s5 }
 0x625   : > { %632 = vperm.xlu1 %1953, %v1841_v34  }
 0x66f   : > { %v589_v52 = vpop.permute.xlu0 %588 }
 0x670   : > { %v591_v56 = vadd.f32 %v589_v52, %v581_v55 }
 0x677   : > { %v615_v59 = vpop.permute.xlu0 %614 }
 0x687   : > { %v602_v50 = vpop.permute.xlu1 %601 }
 0x688   : > { %v604_v51 = vadd.f32 %v602_v50, %v595_v49 }
 0x68a   : > { %610 = vrot.lane.b32.xlu2 %v604_v51, %s2200_s5 }
 0x68f   : > { %v607_v54 = vpop.permute.xlu1 %606 }
 0x690   : > { %v617_v57 = vsel %vm291_vm0, %v607_v54, %v591_v56 }
 0x697   : > { %v633_v62 = vpop.permute.xlu1 %632 }
 0x6e4   : > { %v611_v58 = vpop.permute.xlu2 %610 }
 0x6e5   : > { %v618_v60 = vsel %vm435_vm11, %v617_v57, %v611_v58 }
 0x6e6   : > { %v619_v61 = vsel %vm437_vm12, %v618_v60, %v615_v59  ;;  %v1849_v59 = vld [vmem:[%s2330_s22 + $0x18] sm:$0xff] }
 0x6e7   : > { %1840 = vst [vmem:[%s2332_s23 + $0x8] sm:$0xff] %v619_v61  ;;  %625 = vrot.lane.b32.xlu2 %v619_v61, %s2199_s30  ;;  %v629_v63 = vsub.f32 0.0, %v619_v61 }
 0x6e9   : > { %v635_v0 = vmul.f32 %v633_v62, %v629_v63 }
 0x6eb   : > { %v636_v1 = vmul.f32 1.442695, %v635_v0 }
 0x6ed   : > { %1990 = vpow2.f32 %v636_v1 }
 0x6f3   : > { %v1991_v2 = vpop.eup %1990 }
 0x6f4   : > { %639 = vrot.lane.b32.xlu0 %v1991_v2, %s2200_s5 }
 0x741   : > { %v626_v3 = vpop.permute.xlu2 %625 }
 0x742   : > { %v628_v4 = vsub.f32 %v619_v61, %v626_v3 }
 0x766   : > { %v640_v5 = vpop.permute.xlu0 %639 }
 0x767   : > { %v642_v6 = vmul.f32 %v640_v5, %v628_v4 }
 0x769   : > { %644 = vrot.lane.b32.xlu1 %v642_v6, %s2201_s29 }
 0x7db   : > { %v645_v7 = vpop.permute.xlu1 %644 }
 0x7dc   : > { %v647_v8 = vadd.f32 %v645_v7, %v619_v61 }
 0x7de   : > { %1992 = vtanh.f32 %v647_v8 }
 0x7e4   : > { %v1993_v9 = vpop.eup %1992 }
 0x7e5   : > { %650 = vrot.lane.b32.xlu2 %v1993_v9, %s2200_s5 }
 0x7ed   : > { %774 = vrot.lane.b32.xlu2 %v619_v61, %s2200_s5 }
 0x83f   : > { %v651_v10 = vpop.permute.xlu2 %650 }
 0x840   : > { %v653_v11 = vmul.f32 %v651_v10, %v619_v61 }
 0x842   : > { %1844 = vmatmul.msk.f32.vlgmr.msrb.gmra.mxu0 %vm291_vm0, %v653_v11  ;;  %1845 = vmatmul.msk.f32.vlgmr.msrb.gmra.mxu1 %vm291_vm0, %v653_v11 }
 0x843   : > { %1420 = vmatpush.msrb.mxu1 %v2357_v14  ;;  %1400 = vmatpush.msrb.mxu0 %v2352_v13 }
 0x845   : > { %1421 = vmatpush.msrb.mxu1 %v2369_v16  ;;  %1401 = vmatpush.msrb.mxu0 %v2362_v15 }
 0x847   : > { %1422 = vmatpush.msrb.mxu1 %v2387_v21  ;;  %1402 = vmatpush.msrb.mxu0 %v2382_v20  ;;  %v775_v9 = vpop.permute.xlu2 %774 }
 0x849   : > { %1423 = vmatpush.msrb.mxu1 %v2399_v23  ;;  %1403 = vmatpush.msrb.mxu0 %v2394_v22 }
 0x8bf   : > { %v697_v17 = vpop.f32.mrf.mxu1  ;;  %v677_v25 = vpop.f32.mrf.mxu0 }
 0x8c0   : > { %v701_v18 = vadd.f32 %v1843_v12, %v697_v17  ;;  %v700_v26 = vadd.f32 %v1842_v24, %v677_v25 }
 0x8c2   : > { %1994 = vtanh.f32 %v701_v18  ;;  %v1846_v27 = vmul.f32 -1.442695, %v700_v26  ;;  %v744_v29 = vand.u32 2147483647, %v701_v18  ;;  %v741_v56 = vmax.f32 %v701_v18, 0.0 }
 0x8c3   : > { %vm742_vm15 = vcmp.ne.f32.partialorder %v701_v18, %v701_v18  ;;  %v1847_v60 = vmul.f32 -1.442695, %v701_v18 }
 0x8c4   : > { %1996 = vpow2.f32 %v1846_v27  ;;  %v745_v31 = vsub.f32 0.0, %v744_v29 }
 0x8c6   : > { %v746_v32 = vmul.f32 1.442695, %v745_v31 }
 0x8c8   : > { %v1995_v19 = vpop.eup %1994 }
 0x8c9   : > { %765 = vrot.lane.b32.xlu1 %v1995_v19, %s2199_s30  ;;  %778 = vrot.lane.b32.xlu0 %v1995_v19, %s2200_s5 }
 0x8ca   : > { %v1997_v28 = vpop.eup %1996 }
 0x8cb   : > { %v708_v30 = vadd.f32 1.0, %v1997_v28 }
 0x8cd   : > { %1998 = vrcp.f32 %v708_v30  ;;  %v721_v41 = vand.u32 2147483648, %v708_v30  ;;  %vm715_vm9 = vweird.f32 %v708_v30  ;;  %v719_v42 = vand.u32 2147483647, %v708_v30 }
 0x8ce   : > { %2000 = vpow2.f32 %v746_v32 }
 0x8cf   : > { %v722_v46 = vor.u32 1.1754944e-38, %v721_v41  ;;  %vm720_vm13 = vcmp.eq.f32.partialorder %v719_v42, 8.507059e+37 }
 0x8d1   : > { %760 = vrot.lane.b32.xlu1 %v647_v8, %s2199_s30 }
 0x8d3   : > { %v1999_v33 = vpop.eup %1998 }
 0x8d4   : > { %v711_v34 = vmul.f32 %v1999_v33, %v708_v30  ;;  %v2001_v35 = vpop.eup %2000  ;;  %vm716_vm8 = vweird.f32 %v1999_v33 }
 0x8d5   : > { %v748_v37 = vadd.f32 1.0, %v2001_v35  ;;  %v751_v40 = vmul.f32 -0.5, %v2001_v35  ;;  %vm717_vm10 = vmor %vm715_vm9, %vm716_vm8  ;;  %v754_v47 = vand.u32 2147483647, %v2001_v35 }
 0x8d6   : > { %v712_v36 = vsub.f32 1.0, %v711_v34 }
 0x8d7   : > { %2002 = vlog2.f32 %v748_v37  ;;  %v752_v45 = vadd.f32 1.0, %v751_v40  ;;  %vm755_vm14 = vcmp.lt.f32.partialorder %v754_v47, 0.0004427343 }
 0x8d8   : > { %v713_v38 = vmul.f32 %v1999_v33, %v712_v36  ;;  %2004 = vpow2.f32 %v1847_v60 }
 0x8d9   : > { %v753_v54 = vmul.f32 %v2001_v35, %v752_v45  ;;  %v1851_v45 = vld [vmem:[%s2319_s14 + $0x38] sm:$0xff] }
 0x8da   : > { %v714_v39 = vadd.f32 %v1999_v33, %v713_v38 }
 0x8dc   : > { %v718_v44 = vsel %vm717_vm10, %v1999_v33, %v714_v39 }
 0x8dd   : > { %v2003_v43 = vpop.eup %2002  ;;  %v723_v50 = vsel %vm720_vm13, %v722_v46, %v718_v44 }
 0x8de   : > { %v750_v48 = vmul.f32 0.6931472, %v2003_v43  ;;  %v2005_v61 = vpop.eup %2004 }
 0x8df   : > { %v709_v62 = vadd.f32 1.0, %v2005_v61 }
 0x8e0   : > { %v756_v55 = vsel %vm755_vm14, %v753_v54, %v750_v48 }
 0x8e1   : > { %v757_v57 = vadd.f32 %v756_v55, %v741_v56  ;;  %2006 = vrcp.f32 %v709_v62  ;;  %v736_v4 = vand.u32 2147483648, %v709_v62  ;;  %vm730_vm2 = vweird.f32 %v709_v62 }
 0x8e2   : > { %v734_v5 = vand.u32 2147483647, %v709_v62 }
 0x8e3   : > { %v758_v58 = vsel %vm742_vm15, %v701_v18, %v757_v57  ;;  %v737_v7 = vor.u32 1.1754944e-38, %v736_v4 }
 0x8e4   : > { %vm735_vm4 = vcmp.eq.f32.partialorder %v734_v5, 8.507059e+37 }
 0x8e7   : > { %v2007_v63 = vpop.eup %2006 }
 0x8e8   : > { %v726_v0 = vmul.f32 %v2007_v63, %v709_v62  ;;  %vm731_vm1 = vweird.f32 %v2007_v63 }
 0x8e9   : > { %vm732_vm3 = vmor %vm730_vm2, %vm731_vm1 }
 0x8ea   : > { %v727_v1 = vsub.f32 1.0, %v726_v0  ;;  %v1857_v0 = vld [vmem:[%s2330_s22 + $0x20] sm:$0xff] }
 0x8ec   : > { %v728_v2 = vmul.f32 %v2007_v63, %v727_v1 }
 0x8ee   : > { %v729_v3 = vadd.f32 %v2007_v63, %v728_v2 }
 0x8f0   : > { %v733_v6 = vsel %vm732_vm3, %v2007_v63, %v729_v3 }
 0x8f1   : > { %v738_v8 = vsel %vm735_vm4, %v737_v7, %v733_v6 }
 0x8f2   : > { %v777_v10 = vmul.f32 %v775_v9, %v738_v8 }
 0x93b   : > { %v766_v49 = vpop.permute.xlu1 %765  ;;  %v779_v51 = vpop.permute.xlu0 %778 }
 0x93c   : > { %v768_v52 = vmul.f32 %v766_v49, %v723_v50  ;;  %v781_v53 = vmul.f32 %v779_v51, %v723_v50 }
 0x93e   : > { %783 = vrot.lane.b32.xlu0 %v781_v53, %s2201_s29  ;;  %770 = vrot.lane.b32.xlu2 %v768_v52, %s2201_s29 }
 0x943   : > { %v761_v18 = vpop.permute.xlu1 %760 }
 0x944   : > { %v763_v24 = vmul.f32 %v761_v18, %v723_v50 }
 0x946   : > { %788 = vrot.lane.b32.xlu0 %v723_v50, %s2200_s5  ;;  %796 = vrot.lane.b32.xlu2 %v758_v58, %s2201_s29 }
 0x94e   : > { %814 = vperm.xlu0 %1951, %v1849_v59  }
 0x998   : > { %v771_v17 = vpop.permute.xlu2 %770 }
 0x999   : > { %v773_v25 = vadd.f32 %v771_v17, %v763_v24 }
 0x9a0   : > { %v797_v28 = vpop.permute.xlu2 %796 }
 0x9b0   : > { %v784_v11 = vpop.permute.xlu0 %783 }
 0x9b1   : > { %v786_v12 = vadd.f32 %v784_v11, %v777_v10 }
 0x9b3   : > { %792 = vrot.lane.b32.xlu1 %v786_v12, %s2200_s5 }
 0x9b8   : > { %v789_v19 = vpop.permute.xlu0 %788 }
 0x9b9   : > { %v799_v26 = vsel %vm291_vm0, %v789_v19, %v773_v25 }
 0x9c0   : > { %v815_v32 = vpop.permute.xlu0 %814 }
 0xa25   : > { %v793_v27 = vpop.permute.xlu1 %792 }
 0xa26   : > { %v800_v29 = vsel %vm435_vm11, %v799_v26, %v793_v27 }
 0xa27   : > { %v801_v30 = vsel %vm437_vm12, %v800_v29, %v797_v28 }
 0xa28   : > { %1848 = vst [vmem:[%s2332_s23 + $0x10] sm:$0xff] %v801_v30  ;;  %v811_v31 = vsub.f32 0.0, %v801_v30  ;;  %807 = vrot.lane.b32.xlu1 %v801_v30, %s2199_s30 }
 0xa2a   : > { %v817_v33 = vmul.f32 %v815_v32, %v811_v31 }
 0xa2c   : > { %v818_v34 = vmul.f32 1.442695, %v817_v33 }
 0xa2e   : > { %2008 = vpow2.f32 %v818_v34 }
 0xa34   : > { %v2009_v35 = vpop.eup %2008 }
 0xa35   : > { %821 = vrot.lane.b32.xlu2 %v2009_v35, %s2200_s5 }
 0xa8f   : > { %v822_v38 = vpop.permute.xlu2 %821 }
 0xa9a   : > { %v808_v36 = vpop.permute.xlu1 %807 }
 0xa9b   : > { %v810_v37 = vsub.f32 %v801_v30, %v808_v36 }
 0xa9d   : > { %v824_v39 = vmul.f32 %v822_v38, %v810_v37 }
 0xa9f   : > { %826 = vrot.lane.b32.xlu0 %v824_v39, %s2201_s29 }
 0xb11   : > { %v827_v40 = vpop.permute.xlu0 %826 }
 0xb12   : > { %v829_v41 = vadd.f32 %v827_v40, %v801_v30 }
 0xb14   : > { %2010 = vtanh.f32 %v829_v41 }
 0xb1a   : > { %v2011_v42 = vpop.eup %2010 }
 0xb1b   : > { %832 = vrot.lane.b32.xlu1 %v2011_v42, %s2200_s5 }
 0xb23   : > { %956 = vrot.lane.b32.xlu1 %v801_v30, %s2200_s5 }
 0xb8d   : > { %v833_v43 = vpop.permute.xlu1 %832 }
 0xb8e   : > { %v835_v44 = vmul.f32 %v833_v43, %v801_v30 }
 0xb90   : > { %1852 = vmatmul.msk.f32.vlgmr.msrb.gmra.mxu2 %vm291_vm0, %v835_v44  ;;  %1853 = vmatmul.msk.f32.vlgmr.msrb.gmra.mxu3 %vm291_vm0, %v835_v44 }
 0xb91   : > { %1602 = vmatpush.msrb.mxu3 %v2357_v14  ;;  %1582 = vmatpush.msrb.mxu2 %v2352_v13  ;;  %v1850_v13 = vld [vmem:[%s2319_s14 + $0x30] sm:$0xff] }
 0xb93   : > { %1603 = vmatpush.msrb.mxu3 %v2369_v16  ;;  %1583 = vmatpush.msrb.mxu2 %v2362_v15 }
 0xb95   : > { %1604 = vmatpush.msrb.mxu3 %v2387_v21  ;;  %1584 = vmatpush.msrb.mxu2 %v2382_v20  ;;  %v957_v34 = vpop.permute.xlu1 %956 }
 0xb97   : > { %1605 = vmatpush.msrb.mxu3 %v2399_v23  ;;  %1585 = vmatpush.msrb.mxu2 %v2394_v22 }
 0xc13   : > { %v879_v46 = vpop.f32.mrf.mxu3  ;;  %v859_v15 = vpop.f32.mrf.mxu2 }
 0xc14   : > { %v883_v47 = vadd.f32 %v1851_v45, %v879_v46  ;;  %v882_v16 = vadd.f32 %v1850_v13, %v859_v15 }
 0xc16   : > { %2012 = vtanh.f32 %v883_v47  ;;  %v1854_v21 = vmul.f32 -1.442695, %v882_v16  ;;  %v926_v50 = vand.u32 2147483647, %v883_v47  ;;  %v923_v10 = vmax.f32 %v883_v47, 0.0 }
 0xc17   : > { %vm924_vm10 = vcmp.ne.f32.partialorder %v883_v47, %v883_v47  ;;  %v1855_v17 = vmul.f32 -1.442695, %v883_v47 }
 0xc18   : > { %2014 = vpow2.f32 %v1854_v21  ;;  %v927_v52 = vsub.f32 0.0, %v926_v50 }
 0xc1a   : > { %v928_v56 = vmul.f32 1.442695, %v927_v52 }
 0xc1c   : > { %v2013_v14 = vpop.eup %2012 }
 0xc1d   : > { %947 = vrot.lane.b32.xlu0 %v2013_v14, %s2199_s30  ;;  %960 = vrot.lane.b32.xlu2 %v2013_v14, %s2200_s5 }
 0xc1e   : > { %v2015_v20 = vpop.eup %2014 }
 0xc1f   : > { %v890_v23 = vadd.f32 1.0, %v2015_v20 }
 0xc21   : > { %2016 = vrcp.f32 %v890_v23  ;;  %v903_v54 = vand.u32 2147483648, %v890_v23  ;;  %vm897_vm6 = vweird.f32 %v890_v23  ;;  %v901_v55 = vand.u32 2147483647, %v890_v23 }
 0xc22   : > { %2018 = vpow2.f32 %v928_v56 }
 0xc23   : > { %v904_v58 = vor.u32 1.1754944e-38, %v903_v54  ;;  %vm902_vm8 = vcmp.eq.f32.partialorder %v901_v55, 8.507059e+37  ;;  %v1859_v54 = vld [vmem:[%s2319_s14 + $0x48] sm:$0xff] }
 0xc25   : > { %942 = vrot.lane.b32.xlu0 %v829_v41, %s2199_s30 }
 0xc27   : > { %v2017_v22 = vpop.eup %2016 }
 0xc28   : > { %v893_v48 = vmul.f32 %v2017_v22, %v890_v23  ;;  %vm898_vm5 = vweird.f32 %v2017_v22  ;;  %v2019_v62 = vpop.eup %2018 }
 0xc29   : > { %vm899_vm7 = vmor %vm897_vm6, %vm898_vm5  ;;  %v930_v63 = vadd.f32 1.0, %v2019_v62  ;;  %v933_v1 = vmul.f32 -0.5, %v2019_v62  ;;  %v936_v4 = vand.u32 2147483647, %v2019_v62 }
 0xc2a   : > { %v894_v49 = vsub.f32 1.0, %v893_v48 }
 0xc2b   : > { %2020 = vlog2.f32 %v930_v63  ;;  %v934_v3 = vadd.f32 1.0, %v933_v1  ;;  %vm937_vm9 = vcmp.lt.f32.partialorder %v936_v4, 0.0004427343 }
 0xc2c   : > { %v895_v51 = vmul.f32 %v2017_v22, %v894_v49  ;;  %2022 = vpow2.f32 %v1855_v17 }
 0xc2d   : > { %v935_v8 = vmul.f32 %v2019_v62, %v934_v3 }
 0xc2e   : > { %v896_v53 = vadd.f32 %v2017_v22, %v895_v51 }
 0xc30   : > { %v900_v57 = vsel %vm899_vm7, %v2017_v22, %v896_v53 }
 0xc31   : > { %v905_v60 = vsel %vm902_vm8, %v904_v58, %v900_v57  ;;  %v2021_v2 = vpop.eup %2020  ;;  %v1858_v58 = vld [vmem:[%s2319_s14 + $0x40] sm:$0xff] }
 0xc32   : > { %v932_v5 = vmul.f32 0.6931472, %v2021_v2  ;;  %v2023_v18 = vpop.eup %2022 }
 0xc33   : > { %v891_v19 = vadd.f32 1.0, %v2023_v18 }
 0xc34   : > { %v938_v9 = vsel %vm937_vm9, %v935_v8, %v932_v5 }
 0xc35   : > { %v939_v11 = vadd.f32 %v938_v9, %v923_v10  ;;  %2024 = vrcp.f32 %v891_v19  ;;  %v918_v29 = vand.u32 2147483648, %v891_v19  ;;  %vm912_vm14 = vweird.f32 %v891_v19 }
 0xc36   : > { %v916_v30 = vand.u32 2147483647, %v891_v19 }
 0xc37   : > { %v940_v12 = vsel %vm924_vm10, %v883_v47, %v939_v11  ;;  %v919_v32 = vor.u32 1.1754944e-38, %v918_v29 }
 0xc38   : > { %vm917_vm1 = vcmp.eq.f32.partialorder %v916_v30, 8.507059e+37 }
 0xc3b   : > { %v2025_v24 = vpop.eup %2024 }
 0xc3c   : > { %v908_v25 = vmul.f32 %v2025_v24, %v891_v19  ;;  %vm913_vm13 = vweird.f32 %v2025_v24 }
 0xc3d   : > { %vm914_vm15 = vmor %vm912_vm14, %vm913_vm13 }
 0xc3e   : > { %v909_v26 = vsub.f32 1.0, %v908_v25 }
 0xc40   : > { %v910_v27 = vmul.f32 %v2025_v24, %v909_v26 }
 0xc42   : > { %v911_v28 = vadd.f32 %v2025_v24, %v910_v27 }
 0xc44   : > { %v915_v31 = vsel %vm914_vm15, %v2025_v24, %v911_v28 }
 0xc45   : > { %v920_v33 = vsel %vm917_vm1, %v919_v32, %v915_v31 }
 0xc46   : > { %v959_v35 = vmul.f32 %v957_v34, %v920_v33 }
 0xc77   : > { %v961_v59 = vpop.permute.xlu2 %960 }
 0xc78   : > { %v963_v61 = vmul.f32 %v961_v59, %v905_v60 }
 0xc7a   : > { %965 = vrot.lane.b32.xlu2 %v963_v61, %s2201_s29 }
 0xc82   : > { %970 = vrot.lane.b32.xlu2 %v905_v60, %s2200_s5 }
 0xc8a   : > { %996 = vperm.xlu2 %1952, %v1857_v0  }
 0xc8f   : > { %v948_v6 = vpop.permute.xlu0 %947 }
 0xc90   : > { %v950_v7 = vmul.f32 %v948_v6, %v905_v60 }
 0xc92   : > { %952 = vrot.lane.b32.xlu1 %v950_v7, %s2201_s29 }
 0xc97   : > { %v943_v38 = vpop.permute.xlu0 %942 }
 0xc98   : > { %v945_v40 = vmul.f32 %v943_v38, %v905_v60 }
 0xc9a   : > { %978 = vrot.lane.b32.xlu1 %v940_v12, %s2201_s29 }
 0xcd4   : > { %v966_v36 = vpop.permute.xlu2 %965 }
 0xcd5   : > { %v968_v37 = vadd.f32 %v966_v36, %v959_v35 }
 0xcd7   : > { %974 = vrot.lane.b32.xlu0 %v968_v37, %s2200_s5  ;;  %v1865_v37 = vld [vmem:[%s2330_s22 + $0x28] sm:$0xff] }
 0xcdc   : > { %v971_v41 = vpop.permute.xlu2 %970 }
 0xce4   : > { %v997_v13 = vpop.permute.xlu2 %996 }
 0xd04   : > { %v953_v39 = vpop.permute.xlu1 %952 }
 0xd05   : > { %v955_v42 = vadd.f32 %v953_v39, %v945_v40 }
 0xd07   : > { %v981_v44 = vsel %vm291_vm0, %v971_v41, %v955_v42 }
 0xd0c   : > { %v979_v45 = vpop.permute.xlu1 %978 }
 0xd49   : > { %v975_v43 = vpop.permute.xlu0 %974 }
 0xd4a   : > { %v982_v46 = vsel %vm435_vm11, %v981_v44, %v975_v43 }
 0xd4b   : > { %v983_v47 = vsel %vm437_vm12, %v982_v46, %v979_v45 }
 0xd4c   : > { %1856 = vst [vmem:[%s2332_s23 + $0x18] sm:$0xff] %v983_v47  ;;  %v993_v14 = vsub.f32 0.0, %v983_v47  ;;  %989 = vrot.lane.b32.xlu0 %v983_v47, %s2199_s30 }
 0xd4e   : > { %v999_v15 = vmul.f32 %v997_v13, %v993_v14 }
 0xd50   : > { %v1000_v16 = vmul.f32 1.442695, %v999_v15 }
 0xd52   : > { %2026 = vpow2.f32 %v1000_v16 }
 0xd58   : > { %v2027_v21 = vpop.eup %2026 }
 0xd59   : > { %1003 = vrot.lane.b32.xlu1 %v2027_v21, %s2200_s5 }
 0xdbe   : > { %v990_v20 = vpop.permute.xlu0 %989 }
 0xdbf   : > { %v992_v23 = vsub.f32 %v983_v47, %v990_v20 }
 0xdcb   : > { %v1004_v22 = vpop.permute.xlu1 %1003 }
 0xdcc   : > { %v1006_v48 = vmul.f32 %v1004_v22, %v992_v23 }
 0xdce   : > { %1008 = vrot.lane.b32.xlu2 %v1006_v48, %s2201_s29 }
 0xe28   : > { %v1009_v49 = vpop.permute.xlu2 %1008 }
 0xe29   : > { %v1011_v50 = vadd.f32 %v1009_v49, %v983_v47 }
 0xe2b   : > { %2028 = vtanh.f32 %v1011_v50 }
 0xe31   : > { %v2029_v51 = vpop.eup %2028 }
 0xe32   : > { %1014 = vrot.lane.b32.xlu0 %v2029_v51, %s2200_s5 }
 0xe3a   : > { %1138 = vrot.lane.b32.xlu0 %v983_v47, %s2200_s5 }
 0xea4   : > { %v1015_v52 = vpop.permute.xlu0 %1014 }
 0xea5   : > { %v1017_v53 = vmul.f32 %v1015_v52, %v983_v47 }
 0xea7   : > { %1860 = vmatmul.msk.f32.vlgmr.msra.gmra.mxu0 %vm291_vm0, %v1017_v53  ;;  %1861 = vmatmul.msk.f32.vlgmr.msra.gmra.mxu1 %vm291_vm0, %v1017_v53 }
 0xeac   : > { %v1139_v16 = vpop.permute.xlu0 %1138 }
 0xf24   : > { %v1061_v55 = vpop.f32.mrf.mxu1  ;;  %v1041_v59 = vpop.f32.mrf.mxu0 }
 0xf25   : > { %v1065_v56 = vadd.f32 %v1859_v54, %v1061_v55  ;;  %v1064_v60 = vadd.f32 %v1858_v58, %v1041_v59 }
 0xf27   : > { %2030 = vtanh.f32 %v1065_v56  ;;  %v1862_v61 = vmul.f32 -1.442695, %v1064_v60  ;;  %v1108_v63 = vand.u32 2147483647, %v1065_v56  ;;  %v1105_v32 = vmax.f32 %v1065_v56, 0.0 }
 0xf28   : > { %vm1106_vm7 = vcmp.ne.f32.partialorder %v1065_v56, %v1065_v56  ;;  %v1863_v38 = vmul.f32 -1.442695, %v1065_v56 }
 0xf29   : > { %2032 = vpow2.f32 %v1862_v61  ;;  %v1109_v1 = vsub.f32 0.0, %v1108_v63 }
 0xf2b   : > { %v1110_v2 = vmul.f32 1.442695, %v1109_v1 }
 0xf2d   : > { %v2031_v57 = vpop.eup %2030 }
 0xf2e   : > { %1129 = vrot.lane.b32.xlu2 %v2031_v57, %s2199_s30  ;;  %1142 = vrot.lane.b32.xlu1 %v2031_v57, %s2200_s5 }
 0xf2f   : > { %v2033_v62 = vpop.eup %2032 }
 0xf30   : > { %v1072_v0 = vadd.f32 1.0, %v2033_v62 }
 0xf32   : > { %2034 = vrcp.f32 %v1072_v0  ;;  %v1085_v11 = vand.u32 2147483648, %v1072_v0  ;;  %vm1079_vm3 = vweird.f32 %v1072_v0  ;;  %v1083_v12 = vand.u32 2147483647, %v1072_v0 }
 0xf33   : > { %2036 = vpow2.f32 %v1110_v2 }
 0xf34   : > { %v1086_v24 = vor.u32 1.1754944e-38, %v1085_v11  ;;  %vm1084_vm5 = vcmp.eq.f32.partialorder %v1083_v12, 8.507059e+37  ;;  %v1866_v11 = vld [vmem:[%s2319_s14 + $0x50] sm:$0xff] }
 0xf36   : > { %1124 = vrot.lane.b32.xlu2 %v1011_v50, %s2199_s30 }
 0xf38   : > { %v2035_v3 = vpop.eup %2034 }
 0xf39   : > { %v1075_v4 = vmul.f32 %v2035_v3, %v1072_v0  ;;  %v2037_v5 = vpop.eup %2036  ;;  %vm1080_vm2 = vweird.f32 %v2035_v3 }
 0xf3a   : > { %v1112_v7 = vadd.f32 1.0, %v2037_v5  ;;  %v1115_v10 = vmul.f32 -0.5, %v2037_v5  ;;  %vm1081_vm4 = vmor %vm1079_vm3, %vm1080_vm2  ;;  %v1118_v25 = vand.u32 2147483647, %v2037_v5 }
 0xf3b   : > { %v1076_v6 = vsub.f32 1.0, %v1075_v4 }
 0xf3c   : > { %2038 = vlog2.f32 %v1112_v7  ;;  %v1116_v19 = vadd.f32 1.0, %v1115_v10  ;;  %vm1119_vm6 = vcmp.lt.f32.partialorder %v1118_v25, 0.0004427343  ;;  %v1867_v7 = vld [vmem:[%s2319_s14 + $0x58] sm:$0xff] }
 0xf3d   : > { %v1077_v8 = vmul.f32 %v2035_v3, %v1076_v6  ;;  %2040 = vpow2.f32 %v1863_v38 }
 0xf3e   : > { %v1117_v30 = vmul.f32 %v2037_v5, %v1116_v19 }
 0xf3f   : > { %v1078_v9 = vadd.f32 %v2035_v3, %v1077_v8 }
 0xf41   : > { %v1082_v18 = vsel %vm1081_vm4, %v2035_v3, %v1078_v9 }
 0xf42   : > { %v2039_v17 = vpop.eup %2038  ;;  %v1087_v28 = vsel %vm1084_vm5, %v1086_v24, %v1082_v18 }
 0xf43   : > { %v1114_v26 = vmul.f32 0.6931472, %v2039_v17  ;;  %v2041_v39 = vpop.eup %2040 }
 0xf44   : > { %v1073_v40 = vadd.f32 1.0, %v2041_v39 }
 0xf45   : > { %v1120_v31 = vsel %vm1119_vm6, %v1117_v30, %v1114_v26 }
 0xf46   : > { %v1121_v33 = vadd.f32 %v1120_v31, %v1105_v32  ;;  %2042 = vrcp.f32 %v1073_v40  ;;  %v1100_v46 = vand.u32 2147483648, %v1073_v40  ;;  %vm1094_vm9 = vweird.f32 %v1073_v40 }
 0xf47   : > { %v1098_v47 = vand.u32 2147483647, %v1073_v40 }
 0xf48   : > { %v1122_v34 = vsel %vm1106_vm7, %v1065_v56, %v1121_v33  ;;  %v1101_v13 = vor.u32 1.1754944e-38, %v1100_v46 }
 0xf49   : > { %vm1099_vm13 = vcmp.eq.f32.partialorder %v1098_v47, 8.507059e+37 }
 0xf4c   : > { %v2043_v41 = vpop.eup %2042 }
 0xf4d   : > { %v1090_v42 = vmul.f32 %v2043_v41, %v1073_v40  ;;  %vm1095_vm8 = vweird.f32 %v2043_v41 }
 0xf4e   : > { %vm1096_vm10 = vmor %vm1094_vm9, %vm1095_vm8 }
 0xf4f   : > { %v1091_v43 = vsub.f32 1.0, %v1090_v42 }
 0xf51   : > { %v1092_v44 = vmul.f32 %v2043_v41, %v1091_v43 }
 0xf53   : > { %v1093_v45 = vadd.f32 %v2043_v41, %v1092_v44 }
 0xf55   : > { %v1097_v14 = vsel %vm1096_vm10, %v2043_v41, %v1093_v45 }
 0xf56   : > { %v1102_v15 = vsel %vm1099_vm13, %v1101_v13, %v1097_v14 }
 0xf57   : > { %v1141_v21 = vmul.f32 %v1139_v16, %v1102_v15 }
 0xf88   : > { %v1130_v27 = vpop.permute.xlu2 %1129 }
 0xf89   : > { %v1132_v29 = vmul.f32 %v1130_v27, %v1087_v28 }
 0xf8b   : > { %1134 = vrot.lane.b32.xlu0 %v1132_v29, %s2201_s29 }
 0xf90   : > { %v1125_v48 = vpop.permute.xlu2 %1124 }
 0xf91   : > { %v1127_v50 = vmul.f32 %v1125_v48, %v1087_v28 }
 0xf93   : > { %1160 = vrot.lane.b32.xlu0 %v1122_v34, %s2201_s29 }
 0xfa0   : > { %v1143_v35 = vpop.permute.xlu1 %1142 }
 0xfa1   : > { %v1145_v36 = vmul.f32 %v1143_v35, %v1087_v28 }
 0xfa3   : > { %1147 = vrot.lane.b32.xlu1 %v1145_v36, %s2201_s29 }
 0xfab   : > { %1152 = vrot.lane.b32.xlu1 %v1087_v28, %s2200_s5 }
 0xfb3   : > { %1178 = vperm.xlu1 %1953, %v1865_v37  }
 0xffd   : > { %v1135_v22 = vpop.permute.xlu0 %1134 }
 0xffe   : > { %v1137_v51 = vadd.f32 %v1135_v22, %v1127_v50 }
0x1005   : > { %v1161_v54 = vpop.permute.xlu0 %1160 }
0x1015   : > { %v1148_v20 = vpop.permute.xlu1 %1147 }
0x1016   : > { %v1150_v23 = vadd.f32 %v1148_v20, %v1141_v21 }
0x1018   : > { %1156 = vrot.lane.b32.xlu2 %v1150_v23, %s2200_s5  ;;  %v1873_v23 = vld [vmem:[%s2330_s22 + $0x30] sm:$0xff] }
0x101d   : > { %v1153_v49 = vpop.permute.xlu1 %1152 }
0x101e   : > { %v1163_v52 = vsel %vm291_vm0, %v1153_v49, %v1137_v51 }
0x1025   : > { %v1179_v58 = vpop.permute.xlu1 %1178 }
0x1072   : > { %v1157_v53 = vpop.permute.xlu2 %1156 }
0x1073   : > { %v1164_v55 = vsel %vm435_vm11, %v1163_v52, %v1157_v53 }
0x1074   : > { %v1165_v56 = vsel %vm437_vm12, %v1164_v55, %v1161_v54 }
0x1075   : > { %1864 = vst [vmem:[%s2332_s23 + $0x20] sm:$0xff] %v1165_v56  ;;  %v1175_v57 = vsub.f32 0.0, %v1165_v56  ;;  %1171 = vrot.lane.b32.xlu2 %v1165_v56, %s2199_s30 }
0x1077   : > { %v1181_v59 = vmul.f32 %v1179_v58, %v1175_v57 }
0x1079   : > { %v1182_v60 = vmul.f32 1.442695, %v1181_v59 }
0x107b   : > { %2044 = vpow2.f32 %v1182_v60 }
0x1081   : > { %v2045_v61 = vpop.eup %2044 }
0x1082   : > { %1185 = vrot.lane.b32.xlu0 %v2045_v61, %s2200_s5 }
0x10cf   : > { %v1172_v62 = vpop.permute.xlu2 %1171 }
0x10d0   : > { %v1174_v63 = vsub.f32 %v1165_v56, %v1172_v62 }
0x10f4   : > { %v1186_v0 = vpop.permute.xlu0 %1185 }
0x10f5   : > { %v1188_v1 = vmul.f32 %v1186_v0, %v1174_v63 }
0x10f7   : > { %1190 = vrot.lane.b32.xlu1 %v1188_v1, %s2201_s29 }
0x1169   : > { %v1191_v2 = vpop.permute.xlu1 %1190 }
0x116a   : > { %v1193_v3 = vadd.f32 %v1191_v2, %v1165_v56 }
0x116c   : > { %2046 = vtanh.f32 %v1193_v3 }
0x1172   : > { %v2047_v4 = vpop.eup %2046 }
0x1173   : > { %1196 = vrot.lane.b32.xlu2 %v2047_v4, %s2200_s5 }
0x117b   : > { %1320 = vrot.lane.b32.xlu2 %v1165_v56, %s2200_s5 }
0x11cd   : > { %v1197_v5 = vpop.permute.xlu2 %1196 }
0x11ce   : > { %v1199_v6 = vmul.f32 %v1197_v5, %v1165_v56 }
0x11d0   : > { %1868 = vmatmul.msk.f32.vlgmr.msra.gmra.mxu2 %vm291_vm0, %v1199_v6  ;;  %1869 = vmatmul.msk.f32.vlgmr.msra.gmra.mxu3 %vm291_vm0, %v1199_v6 }
0x11d5   : > { %v1321_v60 = vpop.permute.xlu2 %1320 }
0x1253   : > { %v1243_v8 = vpop.f32.mrf.mxu3  ;;  %v1223_v12 = vpop.f32.mrf.mxu2 }
0x1254   : > { %v1247_v9 = vadd.f32 %v1867_v7, %v1243_v8  ;;  %v1246_v17 = vadd.f32 %v1866_v11, %v1223_v12 }
0x1256   : > { %2048 = vtanh.f32 %v1247_v9  ;;  %v1870_v18 = vmul.f32 -1.442695, %v1246_v17  ;;  %v1290_v24 = vand.u32 2147483647, %v1247_v9  ;;  %v1287_v16 = vmax.f32 %v1247_v9, 0.0 }
0x1257   : > { %vm1288_vm4 = vcmp.ne.f32.partialorder %v1247_v9, %v1247_v9  ;;  %v1871_v22 = vmul.f32 -1.442695, %v1247_v9 }
0x1258   : > { %2050 = vpow2.f32 %v1870_v18  ;;  %v1291_v26 = vsub.f32 0.0, %v1290_v24 }
0x125a   : > { %v1292_v27 = vmul.f32 1.442695, %v1291_v26 }
0x125c   : > { %v2049_v10 = vpop.eup %2048 }
0x125d   : > { %1311 = vrot.lane.b32.xlu1 %v2049_v10, %s2199_s30  ;;  %1324 = vrot.lane.b32.xlu0 %v2049_v10, %s2200_s5 }
0x125e   : > { %v2051_v19 = vpop.eup %2050 }
0x125f   : > { %v1254_v25 = vadd.f32 1.0, %v2051_v19 }
0x1261   : > { %2052 = vrcp.f32 %v1254_v25  ;;  %v1267_v36 = vand.u32 2147483648, %v1254_v25  ;;  %vm1261_vm15 = vweird.f32 %v1254_v25  ;;  %v1265_v37 = vand.u32 2147483647, %v1254_v25 }
0x1262   : > { %2054 = vpow2.f32 %v1292_v27 }
0x1263   : > { %v1268_v41 = vor.u32 1.1754944e-38, %v1267_v36  ;;  %vm1266_vm2 = vcmp.eq.f32.partialorder %v1265_v37, 8.507059e+37  ;;  %v1874_v36 = vld [vmem:[%s2319_s14 + $0x60] sm:$0xff] }
0x1265   : > { %1306 = vrot.lane.b32.xlu1 %v1193_v3, %s2199_s30 }
0x1267   : > { %v2053_v28 = vpop.eup %2052 }
0x1268   : > { %v1257_v29 = vmul.f32 %v2053_v28, %v1254_v25  ;;  %v2055_v30 = vpop.eup %2054  ;;  %vm1262_vm14 = vweird.f32 %v2053_v28 }
0x1269   : > { %v1294_v32 = vadd.f32 1.0, %v2055_v30  ;;  %v1297_v35 = vmul.f32 -0.5, %v2055_v30  ;;  %vm1263_vm1 = vmor %vm1261_vm15, %vm1262_vm14  ;;  %v1300_v42 = vand.u32 2147483647, %v2055_v30 }
0x126a   : > { %v1258_v31 = vsub.f32 1.0, %v1257_v29 }
0x126b   : > { %2056 = vlog2.f32 %v1294_v32  ;;  %v1298_v40 = vadd.f32 1.0, %v1297_v35  ;;  %vm1301_vm3 = vcmp.lt.f32.partialorder %v1300_v42, 0.0004427343  ;;  %v1875_v32 = vld [vmem:[%s2319_s14 + $0x68] sm:$0xff] }
0x126c   : > { %v1259_v33 = vmul.f32 %v2053_v28, %v1258_v31  ;;  %2058 = vpow2.f32 %v1871_v22 }
0x126d   : > { %v1299_v13 = vmul.f32 %v2055_v30, %v1298_v40 }
0x126e   : > { %v1260_v34 = vadd.f32 %v2053_v28, %v1259_v33 }
0x1270   : > { %v1264_v39 = vsel %vm1263_vm1, %v2053_v28, %v1260_v34 }
0x1271   : > { %v2057_v38 = vpop.eup %2056  ;;  %v1269_v45 = vsel %vm1266_vm2, %v1268_v41, %v1264_v39 }
0x1272   : > { %v1296_v43 = vmul.f32 0.6931472, %v2057_v38  ;;  %v2059_v48 = vpop.eup %2058 }
0x1273   : > { %v1255_v49 = vadd.f32 1.0, %v2059_v48 }
0x1274   : > { %v1302_v15 = vsel %vm1301_vm3, %v1299_v13, %v1296_v43 }
0x1275   : > { %v1303_v21 = vadd.f32 %v1302_v15, %v1287_v16  ;;  %2060 = vrcp.f32 %v1255_v49  ;;  %v1282_v55 = vand.u32 2147483648, %v1255_v49  ;;  %vm1276_vm6 = vweird.f32 %v1255_v49 }
0x1276   : > { %v1280_v56 = vand.u32 2147483647, %v1255_v49 }
0x1277   : > { %v1304_v20 = vsel %vm1288_vm4, %v1247_v9, %v1303_v21  ;;  %v1283_v58 = vor.u32 1.1754944e-38, %v1282_v55 }
0x1278   : > { %vm1281_vm8 = vcmp.eq.f32.partialorder %v1280_v56, 8.507059e+37 }
0x127b   : > { %v2061_v50 = vpop.eup %2060 }
0x127c   : > { %v1272_v51 = vmul.f32 %v2061_v50, %v1255_v49  ;;  %vm1277_vm5 = vweird.f32 %v2061_v50 }
0x127d   : > { %vm1278_vm7 = vmor %vm1276_vm6, %vm1277_vm5 }
0x127e   : > { %v1273_v52 = vsub.f32 1.0, %v1272_v51  ;;  %v1881_v51 = vld [vmem:[%s2330_s22 + $0x38] sm:$0xff] }
0x1280   : > { %v1274_v53 = vmul.f32 %v2061_v50, %v1273_v52 }
0x1282   : > { %v1275_v54 = vadd.f32 %v2061_v50, %v1274_v53 }
0x1284   : > { %v1279_v57 = vsel %vm1278_vm7, %v2061_v50, %v1275_v54 }
0x1285   : > { %v1284_v59 = vsel %vm1281_vm8, %v1283_v58, %v1279_v57 }
0x1286   : > { %v1323_v61 = vmul.f32 %v1321_v60, %v1284_v59 }
0x12cf   : > { %v1312_v44 = vpop.permute.xlu1 %1311  ;;  %v1325_v46 = vpop.permute.xlu0 %1324 }
0x12d0   : > { %v1314_v47 = vmul.f32 %v1312_v44, %v1269_v45  ;;  %v1327_v14 = vmul.f32 %v1325_v46, %v1269_v45 }
0x12d2   : > { %1329 = vrot.lane.b32.xlu0 %v1327_v14, %s2201_s29  ;;  %1316 = vrot.lane.b32.xlu2 %v1314_v47, %s2201_s29 }
0x12d7   : > { %v1307_v1 = vpop.permute.xlu1 %1306 }
0x12d8   : > { %v1309_v3 = vmul.f32 %v1307_v1, %v1269_v45 }
0x12da   : > { %1334 = vrot.lane.b32.xlu0 %v1269_v45, %s2200_s5  ;;  %1342 = vrot.lane.b32.xlu2 %v1304_v20, %s2201_s29 }
0x12e2   : > { %1360 = vperm.xlu0 %1951, %v1873_v23  }
0x132c   : > { %v1317_v0 = vpop.permute.xlu2 %1316 }
0x132d   : > { %v1319_v4 = vadd.f32 %v1317_v0, %v1309_v3 }
0x1334   : > { %v1343_v7 = vpop.permute.xlu2 %1342 }
0x1344   : > { %v1330_v62 = vpop.permute.xlu0 %1329 }
0x1345   : > { %v1332_v63 = vadd.f32 %v1330_v62, %v1323_v61 }
0x1347   : > { %1338 = vrot.lane.b32.xlu1 %v1332_v63, %s2200_s5 }
0x134c   : > { %v1335_v2 = vpop.permute.xlu0 %1334 }
0x134d   : > { %v1345_v5 = vsel %vm291_vm0, %v1335_v2, %v1319_v4 }
0x1354   : > { %v1361_v11 = vpop.permute.xlu0 %1360 }
0x13b9   : > { %v1339_v6 = vpop.permute.xlu1 %1338 }
0x13ba   : > { %v1346_v8 = vsel %vm435_vm11, %v1345_v5, %v1339_v6 }
0x13bb   : > { %v1347_v9 = vsel %vm437_vm12, %v1346_v8, %v1343_v7 }
0x13bc   : > { %1872 = vst [vmem:[%s2332_s23 + $0x28] sm:$0xff] %v1347_v9  ;;  %v1357_v10 = vsub.f32 0.0, %v1347_v9  ;;  %1353 = vrot.lane.b32.xlu1 %v1347_v9, %s2199_s30 }
0x13be   : > { %v1363_v12 = vmul.f32 %v1361_v11, %v1357_v10 }
0x13c0   : > { %v1364_v17 = vmul.f32 1.442695, %v1363_v12 }
0x13c2   : > { %2062 = vpow2.f32 %v1364_v17 }
0x13c8   : > { %v2063_v18 = vpop.eup %2062 }
0x13c9   : > { %1367 = vrot.lane.b32.xlu2 %v2063_v18, %s2200_s5 }
0x1423   : > { %v1368_v25 = vpop.permute.xlu2 %1367 }
0x142e   : > { %v1354_v19 = vpop.permute.xlu1 %1353 }
0x142f   : > { %v1356_v24 = vsub.f32 %v1347_v9, %v1354_v19 }
0x1431   : > { %v1370_v26 = vmul.f32 %v1368_v25, %v1356_v24 }
0x1433   : > { %1372 = vrot.lane.b32.xlu0 %v1370_v26, %s2201_s29 }
0x14a5   : > { %v1373_v27 = vpop.permute.xlu0 %1372 }
0x14a6   : > { %v1375_v28 = vadd.f32 %v1373_v27, %v1347_v9 }
0x14a8   : > { %2064 = vtanh.f32 %v1375_v28 }
0x14ae   : > { %v2065_v29 = vpop.eup %2064 }
0x14af   : > { %1378 = vrot.lane.b32.xlu1 %v2065_v29, %s2200_s5 }
0x14b7   : > { %1502 = vrot.lane.b32.xlu1 %v1347_v9, %s2200_s5 }
0x1521   : > { %v1379_v30 = vpop.permute.xlu1 %1378 }
0x1522   : > { %v1381_v31 = vmul.f32 %v1379_v30, %v1347_v9 }
0x1524   : > { %1876 = vmatmul.msk.f32.vlgmr.msrb.gmra.mxu0 %vm291_vm0, %v1381_v31  ;;  %1877 = vmatmul.msk.f32.vlgmr.msrb.gmra.mxu1 %vm291_vm0, %v1381_v31 }
0x1529   : > { %v1503_v17 = vpop.permute.xlu1 %1502 }
0x15a1   : > { %v1425_v33 = vpop.f32.mrf.mxu1  ;;  %v1405_v37 = vpop.f32.mrf.mxu0 }
0x15a2   : > { %v1429_v34 = vadd.f32 %v1875_v32, %v1425_v33  ;;  %v1428_v38 = vadd.f32 %v1874_v36, %v1405_v37 }
0x15a4   : > { %2066 = vtanh.f32 %v1429_v34  ;;  %v1878_v39 = vmul.f32 -1.442695, %v1428_v38  ;;  %v1472_v45 = vand.u32 2147483647, %v1429_v34  ;;  %v1469_v61 = vmax.f32 %v1429_v34, 0.0 }
0x15a5   : > { %vm1470_vm1 = vcmp.ne.f32.partialorder %v1429_v34, %v1429_v34  ;;  %v1879_v0 = vmul.f32 -1.442695, %v1429_v34 }
0x15a6   : > { %2068 = vpow2.f32 %v1878_v39  ;;  %v1473_v47 = vsub.f32 0.0, %v1472_v45 }
0x15a8   : > { %v1474_v16 = vmul.f32 1.442695, %v1473_v47 }
0x15aa   : > { %v2067_v35 = vpop.eup %2066 }
0x15ab   : > { %1493 = vrot.lane.b32.xlu0 %v2067_v35, %s2199_s30  ;;  %1506 = vrot.lane.b32.xlu2 %v2067_v35, %s2200_s5 }
0x15ac   : > { %v2069_v40 = vpop.eup %2068 }
0x15ad   : > { %v1436_v41 = vadd.f32 1.0, %v2069_v40 }
0x15af   : > { %2070 = vrcp.f32 %v1436_v41  ;;  %v1449_v13 = vand.u32 2147483648, %v1436_v41  ;;  %vm1443_vm10 = vweird.f32 %v1436_v41  ;;  %v1447_v15 = vand.u32 2147483647, %v1436_v41 }
0x15b0   : > { %2072 = vpow2.f32 %v1474_v16 }
0x15b1   : > { %v1450_v20 = vor.u32 1.1754944e-38, %v1449_v13  ;;  %vm1448_vm14 = vcmp.eq.f32.partialorder %v1447_v15, 8.507059e+37  ;;  %v1883_v13 = vld [vmem:[%s2319_s14 + $0x78] sm:$0xff] }
0x15b3   : > { %1488 = vrot.lane.b32.xlu0 %v1375_v28, %s2199_s30 }
0x15b5   : > { %v2071_v42 = vpop.eup %2070 }
0x15b6   : > { %v1439_v43 = vmul.f32 %v2071_v42, %v1436_v41  ;;  %vm1444_vm9 = vweird.f32 %v2071_v42  ;;  %v2073_v49 = vpop.eup %2072 }
0x15b7   : > { %vm1445_vm13 = vmor %vm1443_vm10, %vm1444_vm9  ;;  %v1476_v50 = vadd.f32 1.0, %v2073_v49  ;;  %v1479_v52 = vmul.f32 -0.5, %v2073_v49  ;;  %v1482_v55 = vand.u32 2147483647, %v2073_v49 }
0x15b8   : > { %v1440_v44 = vsub.f32 1.0, %v1439_v43 }
0x15b9   : > { %2074 = vlog2.f32 %v1476_v50  ;;  %v1480_v54 = vadd.f32 1.0, %v1479_v52  ;;  %vm1483_vm15 = vcmp.lt.f32.partialorder %v1482_v55, 0.0004427343 }
0x15ba   : > { %v1441_v46 = vmul.f32 %v2071_v42, %v1440_v44  ;;  %2076 = vpow2.f32 %v1879_v0 }
0x15bb   : > { %v1481_v59 = vmul.f32 %v2073_v49, %v1480_v54 }
0x15bc   : > { %v1442_v14 = vadd.f32 %v2071_v42, %v1441_v46 }
0x15be   : > { %v1446_v21 = vsel %vm1445_vm13, %v2071_v42, %v1442_v14 }
0x15bf   : > { %v1451_v22 = vsel %vm1448_vm14, %v1450_v20, %v1446_v21  ;;  %v2075_v53 = vpop.eup %2074  ;;  %v1882_v20 = vld [vmem:[%s2319_s14 + $0x70] sm:$0xff]  ;;  %s1896_s14 = sshll.u32 %s2250_s19, 6  ;;  %s1716_s19 = scalar_lea.sflag [#allocation5], %s2315_s7 }
0x15c0   : > { %v1478_v56 = vmul.f32 0.6931472, %v2075_v53  ;;  %v2077_v1 = vpop.eup %2076 }
0x15c1   : > { %v1437_v2 = vadd.f32 1.0, %v2077_v1 }
0x15c2   : > { %v1484_v60 = vsel %vm1483_vm15, %v1481_v59, %v1478_v56 }
0x15c3   : > { %v1485_v62 = vadd.f32 %v1484_v60, %v1469_v61  ;;  %2078 = vrcp.f32 %v1437_v2  ;;  %v1464_v8 = vand.u32 2147483648, %v1437_v2  ;;  %vm1458_vm3 = vweird.f32 %v1437_v2 }
0x15c4   : > { %v1462_v9 = vand.u32 2147483647, %v1437_v2 }
0x15c5   : > { %v1486_v63 = vsel %vm1470_vm1, %v1429_v34, %v1485_v62  ;;  %v1465_v11 = vor.u32 1.1754944e-38, %v1464_v8 }
0x15c6   : > { %vm1463_vm5 = vcmp.eq.f32.partialorder %v1462_v9, 8.507059e+37 }
0x15c9   : > { %v2079_v3 = vpop.eup %2078 }
0x15ca   : > { %v1454_v4 = vmul.f32 %v2079_v3, %v1437_v2  ;;  %vm1459_vm2 = vweird.f32 %v2079_v3 }
0x15cb   : > { %vm1460_vm4 = vmor %vm1458_vm3, %vm1459_vm2 }
0x15cc   : > { %v1455_v5 = vsub.f32 1.0, %v1454_v4 }
0x15ce   : > { %v1456_v6 = vmul.f32 %v2079_v3, %v1455_v5 }
0x15d0   : > { %v1457_v7 = vadd.f32 %v2079_v3, %v1456_v6 }
0x15d2   : > { %v1461_v10 = vsel %vm1460_vm4, %v2079_v3, %v1457_v7 }
0x15d3   : > { %v1466_v12 = vsel %vm1463_vm5, %v1465_v11, %v1461_v10 }
0x15d4   : > { %v1505_v18 = vmul.f32 %v1503_v17, %v1466_v12 }
0x1605   : > { %v1507_v23 = vpop.permute.xlu2 %1506 }
0x1606   : > { %v1509_v48 = vmul.f32 %v1507_v23, %v1451_v22 }
0x1608   : > { %1511 = vrot.lane.b32.xlu2 %v1509_v48, %s2201_s29 }
0x1610   : > { %1516 = vrot.lane.b32.xlu2 %v1451_v22, %s2200_s5 }
0x1618   : > { %1542 = vperm.xlu2 %1952, %v1881_v51  }
0x161d   : > { %v1494_v57 = vpop.permute.xlu0 %1493 }
0x161e   : > { %v1496_v58 = vmul.f32 %v1494_v57, %v1451_v22 }
0x1620   : > { %1498 = vrot.lane.b32.xlu1 %v1496_v58, %s2201_s29 }
0x1625   : > { %v1489_v25 = vpop.permute.xlu0 %1488 }
0x1626   : > { %v1491_v27 = vmul.f32 %v1489_v25, %v1451_v22 }
0x1628   : > { %1524 = vrot.lane.b32.xlu1 %v1486_v63, %s2201_s29 }
0x1662   : > { %v1512_v19 = vpop.permute.xlu2 %1511 }
0x1663   : > { %v1514_v24 = vadd.f32 %v1512_v19, %v1505_v18 }
0x1665   : > { %1520 = vrot.lane.b32.xlu0 %v1514_v24, %s2200_s5 }
0x166a   : > { %v1517_v28 = vpop.permute.xlu2 %1516 }
0x1672   : > { %v1543_v36 = vpop.permute.xlu2 %1542 }
0x1692   : > { %v1499_v26 = vpop.permute.xlu1 %1498 }
0x1693   : > { %v1501_v29 = vadd.f32 %v1499_v26, %v1491_v27 }
0x1695   : > { %v1527_v31 = vsel %vm291_vm0, %v1517_v28, %v1501_v29 }
0x169a   : > { %v1525_v32 = vpop.permute.xlu1 %1524 }
0x16d7   : > { %v1521_v30 = vpop.permute.xlu0 %1520 }
0x16d8   : > { %v1528_v33 = vsel %vm435_vm11, %v1527_v31, %v1521_v30 }
0x16d9   : > { %v1529_v34 = vsel %vm437_vm12, %v1528_v33, %v1525_v32 }
0x16da   : > { %1880 = vst [vmem:[%s2332_s23 + $0x30] sm:$0xff] %v1529_v34  ;;  %v1539_v35 = vsub.f32 0.0, %v1529_v34  ;;  %1535 = vrot.lane.b32.xlu0 %v1529_v34, %s2199_s30 }
0x16dc   : > { %v1545_v37 = vmul.f32 %v1543_v36, %v1539_v35 }
0x16de   : > { %v1546_v38 = vmul.f32 1.442695, %v1545_v37 }
0x16e0   : > { %2080 = vpow2.f32 %v1546_v38 }
0x16e6   : > { %v2081_v39 = vpop.eup %2080 }
0x16e7   : > { %1549 = vrot.lane.b32.xlu1 %v2081_v39, %s2200_s5 }
0x174c   : > { %v1536_v40 = vpop.permute.xlu0 %1535 }
0x174d   : > { %v1538_v41 = vsub.f32 %v1529_v34, %v1536_v40 }
0x1759   : > { %v1550_v42 = vpop.permute.xlu1 %1549 }
0x175a   : > { %v1552_v43 = vmul.f32 %v1550_v42, %v1538_v41 }
0x175c   : > { %1554 = vrot.lane.b32.xlu2 %v1552_v43, %s2201_s29 }
0x17b6   : > { %v1555_v44 = vpop.permute.xlu2 %1554 }
0x17b7   : > { %v1557_v45 = vadd.f32 %v1555_v44, %v1529_v34 }
0x17b9   : > { %2082 = vtanh.f32 %v1557_v45 }
0x17bf   : > { %v2083_v46 = vpop.eup %2082 }
0x17c0   : > { %1560 = vrot.lane.b32.xlu0 %v2083_v46, %s2200_s5 }
0x17c8   : > { %1684 = vrot.lane.b32.xlu0 %v1529_v34, %s2200_s5 }
0x1832   : > { %v1561_v47 = vpop.permute.xlu0 %1560 }
0x1833   : > { %v1563_v14 = vmul.f32 %v1561_v47, %v1529_v34 }
0x1835   : > { %1884 = vmatmul.msk.f32.vlgmr.msrb.gmra.mxu2 %vm291_vm0, %v1563_v14  ;;  %1885 = vmatmul.msk.f32.vlgmr.msrb.gmra.mxu3 %vm291_vm0, %v1563_v14 }
0x183a   : > { %v1685_v37 = vpop.permute.xlu0 %1684 }
0x18b8   : > { %v1607_v15 = vpop.f32.mrf.mxu3  ;;  %v1587_v23 = vpop.f32.mrf.mxu2 }
0x18b9   : > { %v1611_v16 = vadd.f32 %v1883_v13, %v1607_v15  ;;  %v1610_v22 = vadd.f32 %v1882_v20, %v1587_v23 }
0x18bb   : > { %2084 = vtanh.f32 %v1611_v16  ;;  %v1886_v48 = vmul.f32 -1.442695, %v1610_v22  ;;  %v1654_v50 = vand.u32 2147483647, %v1611_v16  ;;  %v1651_v11 = vmax.f32 %v1611_v16, 0.0 }
0x18bc   : > { %vm1652_vm13 = vcmp.ne.f32.partialorder %v1611_v16, %v1611_v16  ;;  %v1887_v24 = vmul.f32 -1.442695, %v1611_v16 }
0x18bd   : > { %2086 = vpow2.f32 %v1886_v48  ;;  %v1655_v52 = vsub.f32 0.0, %v1654_v50 }
0x18bf   : > { %v1656_v53 = vmul.f32 1.442695, %v1655_v52 }
0x18c1   : > { %v2085_v21 = vpop.eup %2084 }
0x18c2   : > { %1675 = vrot.lane.b32.xlu2 %v2085_v21, %s2199_s30  ;;  %1688 = vrot.lane.b32.xlu1 %v2085_v21, %s2200_s5 }
0x18c3   : > { %v2087_v49 = vpop.eup %2086 }
0x18c4   : > { %v1618_v51 = vadd.f32 1.0, %v2087_v49 }
0x18c6   : > { %2088 = vrcp.f32 %v1618_v51  ;;  %v1631_v62 = vand.u32 2147483648, %v1618_v51  ;;  %vm1625_vm7 = vweird.f32 %v1618_v51  ;;  %v1629_v63 = vand.u32 2147483647, %v1618_v51 }
0x18c7   : > { %2090 = vpow2.f32 %v1656_v53 }
0x18c8   : > { %v1632_v3 = vor.u32 1.1754944e-38, %v1631_v62  ;;  %vm1630_vm9 = vcmp.eq.f32.partialorder %v1629_v63, 8.507059e+37 }
0x18ca   : > { %1670 = vrot.lane.b32.xlu2 %v1557_v45, %s2199_s30 }
0x18cc   : > { %v2089_v54 = vpop.eup %2088 }
0x18cd   : > { %v1621_v55 = vmul.f32 %v2089_v54, %v1618_v51  ;;  %v2091_v56 = vpop.eup %2090  ;;  %vm1626_vm6 = vweird.f32 %v2089_v54 }
0x18ce   : > { %v1658_v58 = vadd.f32 1.0, %v2091_v56  ;;  %v1661_v61 = vmul.f32 -0.5, %v2091_v56  ;;  %vm1627_vm8 = vmor %vm1625_vm7, %vm1626_vm6  ;;  %v1664_v4 = vand.u32 2147483647, %v2091_v56 }
0x18cf   : > { %v1622_v57 = vsub.f32 1.0, %v1621_v55 }
0x18d0   : > { %2092 = vlog2.f32 %v1658_v58  ;;  %v1662_v2 = vadd.f32 1.0, %v1661_v61  ;;  %vm1665_vm10 = vcmp.lt.f32.partialorder %v1664_v4, 0.0004427343 }
0x18d1   : > { %v1623_v59 = vmul.f32 %v2089_v54, %v1622_v57  ;;  %2094 = vpow2.f32 %v1887_v24 }
0x18d2   : > { %v1663_v9 = vmul.f32 %v2091_v56, %v1662_v2 }
0x18d3   : > { %v1624_v60 = vadd.f32 %v2089_v54, %v1623_v59 }
0x18d5   : > { %v1628_v1 = vsel %vm1627_vm8, %v2089_v54, %v1624_v60 }
0x18d6   : > { %v2093_v0 = vpop.eup %2092  ;;  %v1633_v7 = vsel %vm1630_vm9, %v1632_v3, %v1628_v1 }
0x18d7   : > { %v1660_v5 = vmul.f32 0.6931472, %v2093_v0  ;;  %v2095_v25 = vpop.eup %2094 }
0x18d8   : > { %v1619_v26 = vadd.f32 1.0, %v2095_v25 }
0x18d9   : > { %v1666_v10 = vsel %vm1665_vm10, %v1663_v9, %v1660_v5 }
0x18da   : > { %v1667_v12 = vadd.f32 %v1666_v10, %v1651_v11  ;;  %2096 = vrcp.f32 %v1619_v26  ;;  %v1646_v32 = vand.u32 2147483648, %v1619_v26  ;;  %vm1640_vm15 = vweird.f32 %v1619_v26 }
0x18db   : > { %v1644_v33 = vand.u32 2147483647, %v1619_v26 }
0x18dc   : > { %v1668_v17 = vsel %vm1652_vm13, %v1611_v16, %v1667_v12  ;;  %v1647_v35 = vor.u32 1.1754944e-38, %v1646_v32 }
0x18dd   : > { %vm1645_vm2 = vcmp.eq.f32.partialorder %v1644_v33, 8.507059e+37 }
0x18e0   : > { %v2097_v27 = vpop.eup %2096 }
0x18e1   : > { %v1636_v28 = vmul.f32 %v2097_v27, %v1619_v26  ;;  %vm1641_vm14 = vweird.f32 %v2097_v27 }
0x18e2   : > { %vm1642_vm1 = vmor %vm1640_vm15, %vm1641_vm14 }
0x18e3   : > { %v1637_v29 = vsub.f32 1.0, %v1636_v28 }
0x18e5   : > { %v1638_v30 = vmul.f32 %v2097_v27, %v1637_v29 }
0x18e7   : > { %v1639_v31 = vadd.f32 %v2097_v27, %v1638_v30 }
0x18e9   : > { %v1643_v34 = vsel %vm1642_vm1, %v2097_v27, %v1639_v31 }
0x18ea   : > { %v1648_v36 = vsel %vm1645_vm2, %v1647_v35, %v1643_v34 }
0x18eb   : > { %v1687_v38 = vmul.f32 %v1685_v37, %v1648_v36 }
0x191c   : > { %v1676_v6 = vpop.permute.xlu2 %1675 }
0x191d   : > { %v1678_v8 = vmul.f32 %v1676_v6, %v1633_v7 }
0x191f   : > { %1680 = vrot.lane.b32.xlu0 %v1678_v8, %s2201_s29 }
0x1924   : > { %v1671_v42 = vpop.permute.xlu2 %1670 }
0x1925   : > { %v1673_v43 = vmul.f32 %v1671_v42, %v1633_v7 }
0x1927   : > { %1706 = vrot.lane.b32.xlu0 %v1668_v17, %s2201_s29 }
0x1934   : > { %v1689_v18 = vpop.permute.xlu1 %1688 }
0x1935   : > { %v1691_v19 = vmul.f32 %v1689_v18, %v1633_v7 }
0x1937   : > { %1693 = vrot.lane.b32.xlu1 %v1691_v19, %s2201_s29  ;;  %s1727_s29 = scalar_lea.hbm %s2664_s4, %s1896_s14 }
0x1938   : > { %s1730_s20 = sshll.u32 %s1727_s29, 4  ;;  %s1731_s20 = int_to_ptr.hbm [resolvable:$true] %s1730_s20 }
0x193f   : > { %1698 = vrot.lane.b32.xlu1 %v1633_v7, %s2200_s5 }
0x1991   : > { %v1681_v41 = vpop.permute.xlu0 %1680 }
0x1992   : > { %v1683_v45 = vadd.f32 %v1681_v41, %v1673_v43 }
0x1999   : > { %v1707_v14 = vpop.permute.xlu0 %1706 }
0x19a9   : > { %v1694_v39 = vpop.permute.xlu1 %1693 }
0x19aa   : > { %v1696_v40 = vadd.f32 %v1694_v39, %v1687_v38 }
0x19ac   : > { %1702 = vrot.lane.b32.xlu2 %v1696_v40, %s2200_s5  ;;  %s2142_s5 = sshra.s32 %s1731_s20, 4  ;;  %s2143_s5 = int_to_ptr.hbm [resolvable:$true] %s2142_s5 }
0x19ad   : > { %s2144_s25 = scalar_lea.hbm %s2143_s5, 64  ;;  %p2149_p3 = scmp.lt.s32.totalorder %s2143_s5, %s2664_s4 }
0x19ae   : > { %p2145_p6 = scmp.ne.s32.totalorder %s2143_s5, %s2144_s25  ;;  %p2150_p4 = scmp.lt.s32.totalorder %s2148_s8, %s2144_s25 }
0x19b0   : > { %p2146_p0 = pnand %p2145_p6, %p2279_p11  ;;  %p2151_p7 = por %p2150_p4, %p2149_p3 }
0x19b1   : > { %v1699_v44 = vpop.permute.xlu1 %1698 }
0x19b2   : > { %v1709_v46 = vsel %vm291_vm0, %v1699_v44, %v1683_v45  ;;  %p2147_p1 = pneg %p2146_p0 }
0x19b4   : > { %p2152_p5 = pnand %p2151_p7, %p2147_p1 }
0x1a06   : > { %v1703_v47 = vpop.permute.xlu2 %1702 }
0x1a07   : > { %v1710_v13 = vsel %vm435_vm11, %v1709_v46, %v1703_v47 }
0x1a08   : > { %v1711_v15 = vsel %vm437_vm12, %v1710_v13, %v1707_v14 }
0x1a09   : > { %1888 = vst [vmem:[%s2332_s23 + $0x38] sm:$0xff] %v1711_v15 }
0x1a0a   : > { %1714 = vst [vmem:[#allocation2] sm:$0xff] %v1711_v15 }
0x1a0b   : > { %2155 = shalt.err (!%p2152_p5)
}
0x1a0c   : > { %s2202_s7 = smov 128   ;;  %s2203_s23 = smov 8  }
0x1a0d   : > { %1899 = dma.vmem_to_hbm [thread:$0]  (%p2279_p11), %s1729_s13, 1024, %s1731_s20, %s1716_s19, %s2202_s7, %s2202_s7, %s2203_s23  }
0x1a0e PF: > { %s1745_s11 = sand.u32 1, %s2182_s15   ;;  %p2670_p8 = scmp.ge.s32.totalorder %s2194_s18, 2 }
0x1a0f   : > { %s1746_s12 = scalar_lea.sflag [#allocation5], %s1745_s11 }
0x1a10   : > { %p1906_p10 = pnand %p2670_p8, %p2283_p12 }
0x1a12   : > { %p1907_p2 = pneg %p1906_p10 }
0x1a14   : > { %2177 = dma.done.wait (%p1907_p2), %s1746_s12, 1024  }
0x1a15   : > { %2179 = vsyncadd (%p1907_p2), %s1746_s12, 4294966272  ;;  %p17_p9 = scmp.ge.s32.totalorder %s2254_s21, 4   ;;  %s2671_s15 = smov %s2186_s16 }
0x1a16   : > { %s2672_s16 = smov %s2190_s17  ;;  %s2673_s17 = smov %s2266_s24 }
0x1a17   : > { %s2674_s18 = smov %s2254_s21  ;;  %19 = sbr.rel (!%p17_p9) target bundleno = 5 (0x5), region = 109 }
0x1a1c   :  { %1752 = vsyncpa [#allocation4], 1 }
0x1a1d   :  { %1754 = vsyncpa [#allocation4 + $0x1], 1 }
0x1a1e   :  { %1755 = vsyncpa [#allocation5], 1 }
0x1a1f   :  { %1757 = vsyncpa [#allocation5 + $0x1], 1 }

</bundles_post_ra>
